<compile_context>
chip_gen: v5e
topology: v5e:2x2
jax: 0.10.0
libtpu: 0.0.40
codegen_flags: <defaults>
</compile_context>

<pallas_src>
import math
import functools

import jax
import jax.numpy as jnp
from jax import lax
from jax.experimental import pallas as pl
from jax.experimental.pallas import tpu as pltpu

NEG_SLOPE = 0.01  # nn.LeakyReLU(negative_slope=0.01)


def _apply_act(v, act):
    if act == "leaky_relu":
        return jnp.maximum(v, NEG_SLOPE * v)          # one VALU max, slope in (0,1)
    elif act == "elu":
        return jnp.where(v > 0, v, jnp.exp(v) - 1.0)  # EUP exp
    else:
        raise ValueError(f"unsupported activation: {act}")


# ---------------------------------------------------------------------------
# Fully fused DecBlock kernel (one grid step == one batch item)
# ---------------------------------------------------------------------------
def _decblock_kernel(x_ref, enc_ref, wt_ref, bt_ref, wd_ref, bd_ref, wp_ref, bp_ref,
                     o_ref, *, stride, left_z, dilations, res_pad_left, pad_mode, act):
    """
    x_ref, enc_ref : (Cin, L)      f32   decoder input + encoder skip
    wt_ref         : (C, K*Cin)    bf16  tconv weight, tap-stacked (stride-1 conv form)
    bt_ref         : (C, 1)        f32
    wd_ref         : (3, C, 3*C)   bf16  dilated conv weights, tap-stacked, one per unit
    bd_ref         : (3, C, 1)     f32
    wp_ref         : (3, C, C)     bf16  1x1 conv weights
    bp_ref         : (3, C, 1)     f32
    o_ref          : (C, T)        f32   T = L * stride (lane-dense, multiple of 128)
    """
    Cin, L = x_ref.shape
    C, T = o_ref.shape
    K = 2 * stride

    # ---- encoder skip add + bf16 cast, folded into the kernel -------------------
    xe = (x_ref[...] + enc_ref[...]).astype(jnp.bfloat16)                 # (Cin, L)

    # ---- SConvTranspose1d (+ bias + activation) ----------------------------------
    # Written as a stride-1 K-tap conv over the zero-stuffed, trim-folded input.
    # Tap k of that input equals xe @ S_k with a 0/1 selection matrix
    #   S_k[j, t] = 1  iff  t == stride*j + (left_z - k)
    # (exact selection -> no rounding), so no strided stores / relayouts are needed.
    # All K taps are stacked along sublanes and contracted in ONE MXU pass.
    j_iota = lax.broadcasted_iota(jnp.int32, (L, T), 0)    # source index j
    t_iota = lax.broadcasted_iota(jnp.int32, (L, T), 1)    # output index t
    taps = []
    for k in range(K):
        sel = t_iota == (stride * j_iota + (left_z - k))
        sk = jnp.where(sel, 1.0, 0.0).astype(jnp.bfloat16)
        taps.append(jnp.dot(xe, sk, preferred_element_type=jnp.float32)
                    .astype(jnp.bfloat16))
    xstk = jnp.concatenate(taps, axis=0)                                   # (K*Cin, T)
    acc = jnp.dot(wt_ref[...], xstk, preferred_element_type=jnp.float32)   # (C, T)
    acc = acc + bt_ref[...]
    h_f32 = _apply_act(acc, act)
    h = h_f32.astype(jnp.bfloat16)                                         # (C, T)

    # ---- 3 fused ResidualUnits (dilations 1, 3, 9); h never leaves the kernel ----
    # Dilated 3-tap conv with reflect padding: tap shifts (-d, 0, +d for non-causal)
    # are again exact 0/1 gather matmuls; middle (shift==0) tap is h itself.
    r_iota = lax.broadcasted_iota(jnp.int32, (T, T), 0)    # source index j
    c_iota = lax.broadcasted_iota(jnp.int32, (T, T), 1)    # output index t
    for i, d in enumerate(dilations):
        pad_l = res_pad_left[i]
        tap_vals = []
        for k in range(3):
            shift = k * d - pad_l
            if shift == 0:
                tap_vals.append(h)
                continue
            idx = c_iota + shift
            if pad_mode == "reflect":
                a = jnp.maximum(idx, -idx)                         # reflect at 0
                b = (T - 1) - a
                idx = (T - 1) - jnp.maximum(b, -b)                 # reflect at T-1
                sel = r_iota == idx
            else:                                                  # zero padding
                sel = (r_iota == idx) & (idx >= 0) & (idx <= T - 1)
            m = jnp.where(sel, 1.0, 0.0).astype(jnp.bfloat16)
            tap_vals.append(jnp.dot(h, m, preferred_element_type=jnp.float32)
                            .astype(jnp.bfloat16))
        hstk = jnp.concatenate(tap_vals, axis=0)                           # (3C, T)
        y = jnp.dot(wd_ref[i], hstk, preferred_element_type=jnp.float32) + bd_ref[i]
        z = jnp.dot(wp_ref[i], y.astype(jnp.bfloat16),
                    preferred_element_type=jnp.float32) + bp_ref[i]
        z = _apply_act(z, act)
        h_f32 = h.astype(jnp.float32) + z                                  # skip add (f32)
        h = h_f32.astype(jnp.bfloat16)

    o_ref[...] = h_f32.astype(o_ref.dtype)


# ---------------------------------------------------------------------------
# Wrapper: one pallas_call for the whole DecBlock
# ---------------------------------------------------------------------------
def dec_block_forward(packed, x, encoder_output, *, stride, causal=False,
                      pad_mode="reflect", trim_right_ratio=1.0, act="leaky_relu"):
    """DecBlock.forward(x, encoder_output).  x, encoder_output: (B, 2C, L) f32."""
    B, Cin, L = x.shape
    C = packed["wt"].shape[0]
    K = 2 * stride
    T = L * stride
    assert packed["wt"].shape[1] == K * Cin

    # SConvTranspose1d trim amounts (EnCodec), folded into the selection matrices.
    pad_total_t = K - stride
    if causal:
        pad_right_t = math.ceil(pad_total_t * trim_right_ratio)
        pad_left_t = pad_total_t - pad_right_t
    else:
        pad_right_t = pad_total_t // 2
        pad_left_t = pad_total_t - pad_right_t
    left_z = K - 1 - pad_left_t
    right_z = K - 1 - pad_right_t
    assert left_z >= 0 and right_z >= 0, (left_z, right_z)   # guard future K/stride combos

    # Dilated-conv left padding per ResidualUnit (kernel=3, stride=1 -> pad_total=2d).
    dilations = (1, 3, 9)
    res_pad_left = []
    for d in dilations:
        pt = 2 * d
        res_pad_left.append(pt if causal else pt - pt // 2)   # == d for non-causal
    res_pad_left = tuple(res_pad_left)

    kern = functools.partial(
        _decblock_kernel, stride=stride, left_z=left_z, dilations=dilations,
        res_pad_left=res_pad_left, pad_mode=pad_mode, act=act)

    # Advisory cost estimate (real MXU FLOPs incl. gather matmuls, HBM bytes).
    gather_t = K * (2 * Cin * L * T)
    main_t = 2 * C * (K * Cin) * T
    per_unit = 2 * (2 * C * T * T) + 2 * C * (3 * C) * T + 2 * C * C * T
    flops = B * (gather_t + main_t + 3 * per_unit)
    w_bytes = sum(int(v.size) * v.dtype.itemsize
                  for v in jax.tree_util.tree_leaves(packed))
    bytes_accessed = (x.size + encoder_output.size) * 4 + B * C * T * 4 + w_bytes
    transcendentals = 0 if act == "leaky_relu" else B * 4 * C * T
    ce = pl.CostEstimate(flops=flops, transcendentals=transcendentals,
                         bytes_accessed=bytes_accessed)

    return pl.pallas_call(
        kern,
        out_shape=jax.ShapeDtypeStruct((B, C, T), jnp.float32),
        grid=(B,),
        in_specs=[
            pl.BlockSpec((None, Cin, L), lambda b: (b, 0, 0)),       # x
            pl.BlockSpec((None, Cin, L), lambda b: (b, 0, 0)),       # encoder_output
            pl.BlockSpec((C, K * Cin), lambda b: (0, 0)),            # tconv weight (stacked)
            pl.BlockSpec((C, 1), lambda b: (0, 0)),                  # tconv bias
            pl.BlockSpec((3, C, 3 * C), lambda b: (0, 0, 0)),        # dilated weights
            pl.BlockSpec((3, C, 1), lambda b: (0, 0, 0)),            # dilated biases
            pl.BlockSpec((3, C, C), lambda b: (0, 0, 0)),            # pointwise weights
            pl.BlockSpec((3, C, 1), lambda b: (0, 0, 0)),            # pointwise biases
        ],
        out_specs=pl.BlockSpec((None, C, T), lambda b: (b, 0, 0)),   # lane-dense (C, T)
        compiler_params=pltpu.CompilerParams(dimension_semantics=("parallel",)),
        cost_estimate=ce,
    )(x, encoder_output, packed["wt"], packed["bt"],
      packed["wd"], packed["bd"], packed["wp"], packed["bp"])


# ---------------------------------------------------------------------------
# Parameters: raw (PyTorch-layout f32) + packed (kernel-layout bf16)
# ---------------------------------------------------------------------------
def init_decblock_raw(key, out_channels, stride):
    """Synthetic weight_norm-effective weights in PyTorch layouts (f32)."""
    C = out_channels
    Cin = 2 * C
    K = 2 * stride
    ki = iter(jax.random.split(key, 16))
    wt = jax.random.normal(next(ki), (Cin, C, K), jnp.float32) / math.sqrt(Cin * K)
    bt = 0.01 * jax.random.normal(next(ki), (C,), jnp.float32)
    res = []
    for _ in range(3):
        wd = jax.random.normal(next(ki), (C, C, 3), jnp.float32) / math.sqrt(C * 3)
        bd = 0.01 * jax.random.normal(next(ki), (C,), jnp.float32)
        wp = jax.random.normal(next(ki), (C, C, 1), jnp.float32) / math.sqrt(C)
        bp = 0.01 * jax.random.normal(next(ki), (C,), jnp.float32)
        res.append({"wd": wd, "bd": bd, "wp": wp, "bp": bp})
    return {"wt": wt, "bt": bt, "res": res}


def pack_decblock_params(raw):
    """Pack into the tap-stacked, lane-friendly bf16 layouts the kernel expects."""
    wt = raw["wt"]                                              # (Cin, Cout, K)
    Cin, Cout, K = wt.shape
    # ConvTranspose == stride-1 conv with swapped channels + flipped taps.
    w_conv = jnp.flip(jnp.transpose(wt, (1, 0, 2)), axis=-1)    # (Cout, Cin, K)
    wt_stk = jnp.transpose(w_conv, (0, 2, 1)).reshape(Cout, K * Cin)

    wd_stk, bd_all, wp_all, bp_all = [], [], [], []
    for rp in raw["res"]:
        wd = rp["wd"]                                           # (C, C, 3)
        wd_stk.append(jnp.transpose(wd, (0, 2, 1)).reshape(wd.shape[0], -1))  # (C, 3C)
        bd_all.append(rp["bd"].reshape(-1, 1))
        wp_all.append(rp["wp"][:, :, 0])                        # (C, C)
        bp_all.append(rp["bp"].reshape(-1, 1))

    return {
        "wt": wt_stk.astype(jnp.bfloat16),
        "bt": raw["bt"].reshape(-1, 1).astype(jnp.float32),
        "wd": jnp.stack(wd_stk).astype(jnp.bfloat16),
        "bd": jnp.stack(bd_all).astype(jnp.float32),
        "wp": jnp.stack(wp_all).astype(jnp.bfloat16),
        "bp": jnp.stack(bp_all).astype(jnp.float32),
    }


# ---------------------------------------------------------------------------
# Pure-JAX f32 reference (mirrors the PyTorch module, for validation only)
# ---------------------------------------------------------------------------
def _ref_forward(raw, x, enc, *, stride, causal=False, trim_right_ratio=1.0,
                 act="leaky_relu"):
    B, Cin, L = x.shape
    wt, bt = raw["wt"], raw["bt"]                               # (Cin, Cout, K), (Cout,)
    _, Cout, K = wt.shape
    s = stride
    xe = x + enc
    y_full = jnp.zeros((B, Cout, (L - 1) * s + K), jnp.float32)
    for k in range(K):
        contrib = jnp.einsum("bil,io->bol", xe, wt[:, :, k])
        y_full = y_full.at[:, :, k: k + (L - 1) * s + 1: s].add(contrib)
    y_full = y_full + bt[None, :, None]
    pad_total = K - s
    if causal:
        pr = math.ceil(pad_total * trim_right_ratio)
        pl_ = pad_total - pr
    else:
        pr = pad_total // 2
        pl_ = pad_total - pr
    h = y_full[:, :, pl_: y_full.shape[-1] - pr]
    h = _apply_act(h, act)
    T = h.shape[-1]
    for d, rp in zip((1, 3, 9), raw["res"]):
        pt = 2 * d
        pld, prd = (pt, 0) if causal else (pt - pt // 2, pt // 2)
        hp = jnp.pad(h, ((0, 0), (0, 0), (pld, prd)), mode="reflect")
        y = sum(jnp.einsum("bct,oc->bot", hp[:, :, k * d: k * d + T], rp["wd"][:, :, k])
                for k in range(3)) + rp["bd"][None, :, None]
        z = jnp.einsum("bct,oc->bot", y, rp["wp"][:, :, 0]) + rp["bp"][None, :, None]
        z = _apply_act(z, act)
        h = h + z
    return h


# ---------------------------------------------------------------------------
if __name__ == "__main__":
    key = jax.random.PRNGKey(0)
    k_par, k_x, k_e = jax.random.split(key, 3)

    # DecBlock(out_channels=32, stride=2): input (B, 64, 64) -> output (B, 32, 128)
    OUT_CH, STRIDE, B, L = 32, 2, 2, 64
    raw = init_decblock_raw(k_par, OUT_CH, STRIDE)
    packed = pack_decblock_params(raw)
    x = jax.random.normal(k_x, (B, 2 * OUT_CH, L), jnp.float32)
    enc = jax.random.normal(k_e, (B, 2 * OUT_CH, L), jnp.float32)

    fwd = jax.jit(functools.partial(dec_block_forward, stride=STRIDE))
    out = jax.block_until_ready(fwd(packed, x, enc))

    assert out.shape == (B, OUT_CH, L * STRIDE), out.shape
    assert bool(jnp.all(jnp.isfinite(out)))

    # Validate against the pure-JAX f32 reference (bf16 rounding tolerance).
    ref = _ref_forward(raw, x, enc, stride=STRIDE)
    max_err = float(jnp.max(jnp.abs(out - ref)))
    mean_err = float(jnp.mean(jnp.abs(out - ref)))
    assert max_err < 0.5 and mean_err < 0.05, (max_err, mean_err)

    print("KERNEL_OK")
</pallas_src>

<mosaic_0001>
module attributes {stable_mosaic.version = 11 : i64} {
  func.func @_decblock_kernel(%arg0: i32, %arg1: memref<1x64x64xf32, #tpu.memory_space<vmem>>, %arg2: memref<1x64x64xf32, #tpu.memory_space<vmem>>, %arg3: memref<32x256xbf16, #tpu.memory_space<vmem>>, %arg4: memref<32x1xf32, #tpu.memory_space<vmem>>, %arg5: memref<3x32x96xbf16, #tpu.memory_space<vmem>>, %arg6: memref<3x32x1xf32, #tpu.memory_space<vmem>>, %arg7: memref<3x32x32xbf16, #tpu.memory_space<vmem>>, %arg8: memref<3x32x1xf32, #tpu.memory_space<vmem>>, %arg9: memref<1x32x128xf32, #tpu.memory_space<vmem>>) attributes {dimension_semantics = [#tpu.dimension_semantics<parallel>], iteration_bounds = array<i64: 2>, scalar_prefetch = 0 : i64, scratch_operands = 0 : i64, tpu.core_type = #tpu.core_type<tc>, window_params = [{transform_indices = @transform_0, window_bounds = array<i64: 1, 64, 64>}, {transform_indices = @transform_1, window_bounds = array<i64: 1, 64, 64>}, {pipeline_mode = #tpu.pipeline_mode<synchronous>, transform_indices = @transform_2, window_bounds = array<i64: 32, 256>}, {pipeline_mode = #tpu.pipeline_mode<synchronous>, transform_indices = @transform_3, window_bounds = array<i64: 32, 1>}, {pipeline_mode = #tpu.pipeline_mode<synchronous>, transform_indices = @transform_4, window_bounds = array<i64: 3, 32, 96>}, {pipeline_mode = #tpu.pipeline_mode<synchronous>, transform_indices = @transform_5, window_bounds = array<i64: 3, 32, 1>}, {pipeline_mode = #tpu.pipeline_mode<synchronous>, transform_indices = @transform_6, window_bounds = array<i64: 3, 32, 32>}, {pipeline_mode = #tpu.pipeline_mode<synchronous>, transform_indices = @transform_7, window_bounds = array<i64: 3, 32, 1>}, {transform_indices = @transform_8, window_bounds = array<i64: 1, 32, 128>}]} {
    %c0 = arith.constant 0 : index
    %c0_0 = arith.constant 0 : index
    %c0_1 = arith.constant 0 : index
    %0 = vector.load %arg1[%c0, %c0_0, %c0_1] : memref<1x64x64xf32, #tpu.memory_space<vmem>>, vector<1x64x64xf32>
    %1 = vector.shape_cast %0 : vector<1x64x64xf32> to vector<64x64xf32>
    %c0_2 = arith.constant 0 : index
    %c0_3 = arith.constant 0 : index
    %c0_4 = arith.constant 0 : index
    %2 = vector.load %arg2[%c0_2, %c0_3, %c0_4] : memref<1x64x64xf32, #tpu.memory_space<vmem>>, vector<1x64x64xf32>
    %3 = vector.shape_cast %2 : vector<1x64x64xf32> to vector<64x64xf32>
    %4 = arith.addf %1, %3 : vector<64x64xf32>
    %5 = arith.truncf %4 : vector<64x64xf32> to vector<64x64xbf16>
    %6 = tpu.iota {dimensions = array<i32: 0>} : vector<64x128xi32>
    %7 = tpu.iota {dimensions = array<i32: 1>} : vector<64x128xi32>
    %c2_i32 = arith.constant 2 : i32
    %8 = vector.broadcast %c2_i32 : i32 to vector<64x128xi32>
    %9 = arith.muli %8, %6 : vector<64x128xi32>
    %c2_i32_5 = arith.constant 2 : i32
    %10 = vector.broadcast %c2_i32_5 : i32 to vector<64x128xi32>
    %11 = arith.addi %9, %10 : vector<64x128xi32>
    %12 = arith.cmpi eq, %7, %11 : vector<64x128xi32>
    %cst = arith.constant 1.000000e+00 : f32
    %cst_6 = arith.constant 0.000000e+00 : f32
    %13 = vector.broadcast %cst : f32 to vector<64x128xf32>
    %14 = vector.broadcast %cst_6 : f32 to vector<64x128xf32>
    %15 = arith.select %12, %13, %14 : vector<64x128xi1>, vector<64x128xf32>
    %16 = arith.truncf %15 : vector<64x128xf32> to vector<64x128xbf16>
    %cst_7 = arith.constant dense<0.000000e+00> : vector<64x128xf32>
    %17 = tpu.matmul %5, %16, %cst_7 {dimension_numbers = #tpu.dot_dimension_numbers<[1], [0], [0], [1], [0, 0, 1, 1], [], []>} : vector<64x64xbf16>, vector<64x128xbf16>, vector<64x128xf32> -> vector<64x128xf32>
    %18 = arith.truncf %17 : vector<64x128xf32> to vector<64x128xbf16>
    %c2_i32_8 = arith.constant 2 : i32
    %19 = vector.broadcast %c2_i32_8 : i32 to vector<64x128xi32>
    %20 = arith.muli %19, %6 : vector<64x128xi32>
    %c1_i32 = arith.constant 1 : i32
    %21 = vector.broadcast %c1_i32 : i32 to vector<64x128xi32>
    %22 = arith.addi %20, %21 : vector<64x128xi32>
    %23 = arith.cmpi eq, %7, %22 : vector<64x128xi32>
    %cst_9 = arith.constant 1.000000e+00 : f32
    %cst_10 = arith.constant 0.000000e+00 : f32
    %24 = vector.broadcast %cst_9 : f32 to vector<64x128xf32>
    %25 = vector.broadcast %cst_10 : f32 to vector<64x128xf32>
    %26 = arith.select %23, %24, %25 : vector<64x128xi1>, vector<64x128xf32>
    %27 = arith.truncf %26 : vector<64x128xf32> to vector<64x128xbf16>
    %cst_11 = arith.constant dense<0.000000e+00> : vector<64x128xf32>
    %28 = tpu.matmul %5, %27, %cst_11 {dimension_numbers = #tpu.dot_dimension_numbers<[1], [0], [0], [1], [0, 0, 1, 1], [], []>} : vector<64x64xbf16>, vector<64x128xbf16>, vector<64x128xf32> -> vector<64x128xf32>
    %29 = arith.truncf %28 : vector<64x128xf32> to vector<64x128xbf16>
    %c2_i32_12 = arith.constant 2 : i32
    %30 = vector.broadcast %c2_i32_12 : i32 to vector<64x128xi32>
    %31 = arith.muli %30, %6 : vector<64x128xi32>
    %c0_i32 = arith.constant 0 : i32
    %32 = vector.broadcast %c0_i32 : i32 to vector<64x128xi32>
    %33 = arith.addi %31, %32 : vector<64x128xi32>
    %34 = arith.cmpi eq, %7, %33 : vector<64x128xi32>
    %cst_13 = arith.constant 1.000000e+00 : f32
    %cst_14 = arith.constant 0.000000e+00 : f32
    %35 = vector.broadcast %cst_13 : f32 to vector<64x128xf32>
    %36 = vector.broadcast %cst_14 : f32 to vector<64x128xf32>
    %37 = arith.select %34, %35, %36 : vector<64x128xi1>, vector<64x128xf32>
    %38 = arith.truncf %37 : vector<64x128xf32> to vector<64x128xbf16>
    %cst_15 = arith.constant dense<0.000000e+00> : vector<64x128xf32>
    %39 = tpu.matmul %5, %38, %cst_15 {dimension_numbers = #tpu.dot_dimension_numbers<[1], [0], [0], [1], [0, 0, 1, 1], [], []>} : vector<64x64xbf16>, vector<64x128xbf16>, vector<64x128xf32> -> vector<64x128xf32>
    %40 = arith.truncf %39 : vector<64x128xf32> to vector<64x128xbf16>
    %c2_i32_16 = arith.constant 2 : i32
    %41 = vector.broadcast %c2_i32_16 : i32 to vector<64x128xi32>
    %42 = arith.muli %41, %6 : vector<64x128xi32>
    %c-1_i32 = arith.constant -1 : i32
    %43 = vector.broadcast %c-1_i32 : i32 to vector<64x128xi32>
    %44 = arith.addi %42, %43 : vector<64x128xi32>
    %45 = arith.cmpi eq, %7, %44 : vector<64x128xi32>
    %cst_17 = arith.constant 1.000000e+00 : f32
    %cst_18 = arith.constant 0.000000e+00 : f32
    %46 = vector.broadcast %cst_17 : f32 to vector<64x128xf32>
    %47 = vector.broadcast %cst_18 : f32 to vector<64x128xf32>
    %48 = arith.select %45, %46, %47 : vector<64x128xi1>, vector<64x128xf32>
    %49 = arith.truncf %48 : vector<64x128xf32> to vector<64x128xbf16>
    %cst_19 = arith.constant dense<0.000000e+00> : vector<64x128xf32>
    %50 = tpu.matmul %5, %49, %cst_19 {dimension_numbers = #tpu.dot_dimension_numbers<[1], [0], [0], [1], [0, 0, 1, 1], [], []>} : vector<64x64xbf16>, vector<64x128xbf16>, vector<64x128xf32> -> vector<64x128xf32>
    %51 = arith.truncf %50 : vector<64x128xf32> to vector<64x128xbf16>
    %52 = tpu.concatenate %18, %29, %40, %51 in 0 : vector<64x128xbf16>, vector<64x128xbf16>, vector<64x128xbf16>, vector<64x128xbf16> -> vector<256x128xbf16>
    %c0_20 = arith.constant 0 : index
    %c0_21 = arith.constant 0 : index
    %53 = vector.load %arg3[%c0_20, %c0_21] : memref<32x256xbf16, #tpu.memory_space<vmem>>, vector<32x256xbf16>
    %cst_22 = arith.constant dense<0.000000e+00> : vector<32x128xf32>
    %54 = tpu.matmul %53, %52, %cst_22 {dimension_numbers = #tpu.dot_dimension_numbers<[1], [0], [0], [1], [0, 0, 1, 1], [], []>} : vector<32x256xbf16>, vector<256x128xbf16>, vector<32x128xf32> -> vector<32x128xf32>
    %c0_23 = arith.constant 0 : index
    %c0_24 = arith.constant 0 : index
    %55 = vector.load %arg4[%c0_23, %c0_24] : memref<32x1xf32, #tpu.memory_space<vmem>>, vector<32x1xf32>
    %56 = vector.broadcast %55 : vector<32x1xf32> to vector<32x128xf32>
    %57 = arith.addf %54, %56 : vector<32x128xf32>
    %cst_25 = arith.constant 0.00999999977 : f32
    %58 = vector.broadcast %cst_25 : f32 to vector<32x128xf32>
    %59 = arith.mulf %58, %57 : vector<32x128xf32>
    %60 = arith.maximumf %57, %59 : vector<32x128xf32>
    %61 = arith.truncf %60 : vector<32x128xf32> to vector<32x128xbf16>
    %62 = tpu.iota {dimensions = array<i32: 0>} : vector<128x128xi32>
    %63 = tpu.iota {dimensions = array<i32: 1>} : vector<128x128xi32>
    %c-1_i32_26 = arith.constant -1 : i32
    %64 = vector.broadcast %c-1_i32_26 : i32 to vector<128x128xi32>
    %65 = arith.addi %63, %64 : vector<128x128xi32>
    %c0_i32_27 = arith.constant 0 : i32
    %66 = vector.broadcast %c0_i32_27 : i32 to vector<128x128xi32>
    %67 = arith.subi %66, %65 : vector<128x128xi32>
    %68 = arith.maxsi %65, %67 : vector<128x128xi32>
    %c127_i32 = arith.constant 127 : i32
    %69 = vector.broadcast %c127_i32 : i32 to vector<128x128xi32>
    %70 = arith.subi %69, %68 : vector<128x128xi32>
    %c0_i32_28 = arith.constant 0 : i32
    %71 = vector.broadcast %c0_i32_28 : i32 to vector<128x128xi32>
    %72 = arith.subi %71, %70 : vector<128x128xi32>
    %73 = arith.maxsi %70, %72 : vector<128x128xi32>
    %c127_i32_29 = arith.constant 127 : i32
    %74 = vector.broadcast %c127_i32_29 : i32 to vector<128x128xi32>
    %75 = arith.subi %74, %73 : vector<128x128xi32>
    %76 = arith.cmpi eq, %62, %75 : vector<128x128xi32>
    %cst_30 = arith.constant 1.000000e+00 : f32
    %cst_31 = arith.constant 0.000000e+00 : f32
    %77 = vector.broadcast %cst_30 : f32 to vector<128x128xf32>
    %78 = vector.broadcast %cst_31 : f32 to vector<128x128xf32>
    %79 = arith.select %76, %77, %78 : vector<128x128xi1>, vector<128x128xf32>
    %80 = arith.truncf %79 : vector<128x128xf32> to vector<128x128xbf16>
    %cst_32 = arith.constant dense<0.000000e+00> : vector<32x128xf32>
    %81 = tpu.matmul %61, %80, %cst_32 {dimension_numbers = #tpu.dot_dimension_numbers<[1], [0], [0], [1], [0, 0, 1, 1], [], []>} : vector<32x128xbf16>, vector<128x128xbf16>, vector<32x128xf32> -> vector<32x128xf32>
    %82 = arith.truncf %81 : vector<32x128xf32> to vector<32x128xbf16>
    %c1_i32_33 = arith.constant 1 : i32
    %83 = vector.broadcast %c1_i32_33 : i32 to vector<128x128xi32>
    %84 = arith.addi %63, %83 : vector<128x128xi32>
    %c0_i32_34 = arith.constant 0 : i32
    %85 = vector.broadcast %c0_i32_34 : i32 to vector<128x128xi32>
    %86 = arith.subi %85, %84 : vector<128x128xi32>
    %87 = arith.maxsi %84, %86 : vector<128x128xi32>
    %c127_i32_35 = arith.constant 127 : i32
    %88 = vector.broadcast %c127_i32_35 : i32 to vector<128x128xi32>
    %89 = arith.subi %88, %87 : vector<128x128xi32>
    %c0_i32_36 = arith.constant 0 : i32
    %90 = vector.broadcast %c0_i32_36 : i32 to vector<128x128xi32>
    %91 = arith.subi %90, %89 : vector<128x128xi32>
    %92 = arith.maxsi %89, %91 : vector<128x128xi32>
    %c127_i32_37 = arith.constant 127 : i32
    %93 = vector.broadcast %c127_i32_37 : i32 to vector<128x128xi32>
    %94 = arith.subi %93, %92 : vector<128x128xi32>
    %95 = arith.cmpi eq, %62, %94 : vector<128x128xi32>
    %cst_38 = arith.constant 1.000000e+00 : f32
    %cst_39 = arith.constant 0.000000e+00 : f32
    %96 = vector.broadcast %cst_38 : f32 to vector<128x128xf32>
    %97 = vector.broadcast %cst_39 : f32 to vector<128x128xf32>
    %98 = arith.select %95, %96, %97 : vector<128x128xi1>, vector<128x128xf32>
    %99 = arith.truncf %98 : vector<128x128xf32> to vector<128x128xbf16>
    %cst_40 = arith.constant dense<0.000000e+00> : vector<32x128xf32>
    %100 = tpu.matmul %61, %99, %cst_40 {dimension_numbers = #tpu.dot_dimension_numbers<[1], [0], [0], [1], [0, 0, 1, 1], [], []>} : vector<32x128xbf16>, vector<128x128xbf16>, vector<32x128xf32> -> vector<32x128xf32>
    %101 = arith.truncf %100 : vector<32x128xf32> to vector<32x128xbf16>
    %102 = tpu.concatenate %82, %61, %101 in 0 : vector<32x128xbf16>, vector<32x128xbf16>, vector<32x128xbf16> -> vector<96x128xbf16>
    %c0_41 = arith.constant 0 : index
    %c0_42 = arith.constant 0 : index
    %c0_43 = arith.constant 0 : index
    %103 = vector.load %arg5[%c0_41, %c0_42, %c0_43] : memref<3x32x96xbf16, #tpu.memory_space<vmem>>, vector<1x32x96xbf16>
    %104 = vector.shape_cast %103 : vector<1x32x96xbf16> to vector<32x96xbf16>
    %cst_44 = arith.constant dense<0.000000e+00> : vector<32x128xf32>
    %105 = tpu.matmul %104, %102, %cst_44 {dimension_numbers = #tpu.dot_dimension_numbers<[1], [0], [0], [1], [0, 0, 1, 1], [], []>} : vector<32x96xbf16>, vector<96x128xbf16>, vector<32x128xf32> -> vector<32x128xf32>
    %c0_45 = arith.constant 0 : index
    %c0_46 = arith.constant 0 : index
    %c0_47 = arith.constant 0 : index
    %106 = vector.load %arg6[%c0_45, %c0_46, %c0_47] : memref<3x32x1xf32, #tpu.memory_space<vmem>>, vector<1x32x1xf32>
    %107 = vector.shape_cast %106 : vector<1x32x1xf32> to vector<32x1xf32>
    %108 = vector.broadcast %107 : vector<32x1xf32> to vector<32x128xf32>
    %109 = arith.addf %105, %108 : vector<32x128xf32>
    %c0_48 = arith.constant 0 : index
    %c0_49 = arith.constant 0 : index
    %c0_50 = arith.constant 0 : index
    %110 = vector.load %arg7[%c0_48, %c0_49, %c0_50] : memref<3x32x32xbf16, #tpu.memory_space<vmem>>, vector<1x32x32xbf16>
    %111 = vector.shape_cast %110 : vector<1x32x32xbf16> to vector<32x32xbf16>
    %112 = arith.truncf %109 : vector<32x128xf32> to vector<32x128xbf16>
    %cst_51 = arith.constant dense<0.000000e+00> : vector<32x128xf32>
    %113 = tpu.matmul %111, %112, %cst_51 {dimension_numbers = #tpu.dot_dimension_numbers<[1], [0], [0], [1], [0, 0, 1, 1], [], []>} : vector<32x32xbf16>, vector<32x128xbf16>, vector<32x128xf32> -> vector<32x128xf32>
    %c0_52 = arith.constant 0 : index
    %c0_53 = arith.constant 0 : index
    %c0_54 = arith.constant 0 : index
    %114 = vector.load %arg8[%c0_52, %c0_53, %c0_54] : memref<3x32x1xf32, #tpu.memory_space<vmem>>, vector<1x32x1xf32>
    %115 = vector.shape_cast %114 : vector<1x32x1xf32> to vector<32x1xf32>
    %116 = vector.broadcast %115 : vector<32x1xf32> to vector<32x128xf32>
    %117 = arith.addf %113, %116 : vector<32x128xf32>
    %cst_55 = arith.constant 0.00999999977 : f32
    %118 = vector.broadcast %cst_55 : f32 to vector<32x128xf32>
    %119 = arith.mulf %118, %117 : vector<32x128xf32>
    %120 = arith.maximumf %117, %119 : vector<32x128xf32>
    %121 = arith.extf %61 : vector<32x128xbf16> to vector<32x128xf32>
    %122 = arith.addf %121, %120 : vector<32x128xf32>
    %123 = arith.truncf %122 : vector<32x128xf32> to vector<32x128xbf16>
    %c-3_i32 = arith.constant -3 : i32
    %124 = vector.broadcast %c-3_i32 : i32 to vector<128x128xi32>
    %125 = arith.addi %63, %124 : vector<128x128xi32>
    %c0_i32_56 = arith.constant 0 : i32
    %126 = vector.broadcast %c0_i32_56 : i32 to vector<128x128xi32>
    %127 = arith.subi %126, %125 : vector<128x128xi32>
    %128 = arith.maxsi %125, %127 : vector<128x128xi32>
    %c127_i32_57 = arith.constant 127 : i32
    %129 = vector.broadcast %c127_i32_57 : i32 to vector<128x128xi32>
    %130 = arith.subi %129, %128 : vector<128x128xi32>
    %c0_i32_58 = arith.constant 0 : i32
    %131 = vector.broadcast %c0_i32_58 : i32 to vector<128x128xi32>
    %132 = arith.subi %131, %130 : vector<128x128xi32>
    %133 = arith.maxsi %130, %132 : vector<128x128xi32>
    %c127_i32_59 = arith.constant 127 : i32
    %134 = vector.broadcast %c127_i32_59 : i32 to vector<128x128xi32>
    %135 = arith.subi %134, %133 : vector<128x128xi32>
    %136 = arith.cmpi eq, %62, %135 : vector<128x128xi32>
    %cst_60 = arith.constant 1.000000e+00 : f32
    %cst_61 = arith.constant 0.000000e+00 : f32
    %137 = vector.broadcast %cst_60 : f32 to vector<128x128xf32>
    %138 = vector.broadcast %cst_61 : f32 to vector<128x128xf32>
    %139 = arith.select %136, %137, %138 : vector<128x128xi1>, vector<128x128xf32>
    %140 = arith.truncf %139 : vector<128x128xf32> to vector<128x128xbf16>
    %cst_62 = arith.constant dense<0.000000e+00> : vector<32x128xf32>
    %141 = tpu.matmul %123, %140, %cst_62 {dimension_numbers = #tpu.dot_dimension_numbers<[1], [0], [0], [1], [0, 0, 1, 1], [], []>} : vector<32x128xbf16>, vector<128x128xbf16>, vector<32x128xf32> -> vector<32x128xf32>
    %142 = arith.truncf %141 : vector<32x128xf32> to vector<32x128xbf16>
    %c3_i32 = arith.constant 3 : i32
    %143 = vector.broadcast %c3_i32 : i32 to vector<128x128xi32>
    %144 = arith.addi %63, %143 : vector<128x128xi32>
    %c0_i32_63 = arith.constant 0 : i32
    %145 = vector.broadcast %c0_i32_63 : i32 to vector<128x128xi32>
    %146 = arith.subi %145, %144 : vector<128x128xi32>
    %147 = arith.maxsi %144, %146 : vector<128x128xi32>
    %c127_i32_64 = arith.constant 127 : i32
    %148 = vector.broadcast %c127_i32_64 : i32 to vector<128x128xi32>
    %149 = arith.subi %148, %147 : vector<128x128xi32>
    %c0_i32_65 = arith.constant 0 : i32
    %150 = vector.broadcast %c0_i32_65 : i32 to vector<128x128xi32>
    %151 = arith.subi %150, %149 : vector<128x128xi32>
    %152 = arith.maxsi %149, %151 : vector<128x128xi32>
    %c127_i32_66 = arith.constant 127 : i32
    %153 = vector.broadcast %c127_i32_66 : i32 to vector<128x128xi32>
    %154 = arith.subi %153, %152 : vector<128x128xi32>
    %155 = arith.cmpi eq, %62, %154 : vector<128x128xi32>
    %cst_67 = arith.constant 1.000000e+00 : f32
    %cst_68 = arith.constant 0.000000e+00 : f32
    %156 = vector.broadcast %cst_67 : f32 to vector<128x128xf32>
    %157 = vector.broadcast %cst_68 : f32 to vector<128x128xf32>
    %158 = arith.select %155, %156, %157 : vector<128x128xi1>, vector<128x128xf32>
    %159 = arith.truncf %158 : vector<128x128xf32> to vector<128x128xbf16>
    %cst_69 = arith.constant dense<0.000000e+00> : vector<32x128xf32>
    %160 = tpu.matmul %123, %159, %cst_69 {dimension_numbers = #tpu.dot_dimension_numbers<[1], [0], [0], [1], [0, 0, 1, 1], [], []>} : vector<32x128xbf16>, vector<128x128xbf16>, vector<32x128xf32> -> vector<32x128xf32>
    %161 = arith.truncf %160 : vector<32x128xf32> to vector<32x128xbf16>
    %162 = tpu.concatenate %142, %123, %161 in 0 : vector<32x128xbf16>, vector<32x128xbf16>, vector<32x128xbf16> -> vector<96x128xbf16>
    %c1 = arith.constant 1 : index
    %c0_70 = arith.constant 0 : index
    %c0_71 = arith.constant 0 : index
    %163 = vector.load %arg5[%c1, %c0_70, %c0_71] : memref<3x32x96xbf16, #tpu.memory_space<vmem>>, vector<1x32x96xbf16>
    %164 = vector.shape_cast %163 : vector<1x32x96xbf16> to vector<32x96xbf16>
    %cst_72 = arith.constant dense<0.000000e+00> : vector<32x128xf32>
    %165 = tpu.matmul %164, %162, %cst_72 {dimension_numbers = #tpu.dot_dimension_numbers<[1], [0], [0], [1], [0, 0, 1, 1], [], []>} : vector<32x96xbf16>, vector<96x128xbf16>, vector<32x128xf32> -> vector<32x128xf32>
    %c1_73 = arith.constant 1 : index
    %c0_74 = arith.constant 0 : index
    %c0_75 = arith.constant 0 : index
    %166 = vector.load %arg6[%c1_73, %c0_74, %c0_75] : memref<3x32x1xf32, #tpu.memory_space<vmem>>, vector<1x32x1xf32>
    %167 = vector.shape_cast %166 : vector<1x32x1xf32> to vector<32x1xf32>
    %168 = vector.broadcast %167 : vector<32x1xf32> to vector<32x128xf32>
    %169 = arith.addf %165, %168 : vector<32x128xf32>
    %c1_76 = arith.constant 1 : index
    %c0_77 = arith.constant 0 : index
    %c0_78 = arith.constant 0 : index
    %170 = vector.load %arg7[%c1_76, %c0_77, %c0_78] : memref<3x32x32xbf16, #tpu.memory_space<vmem>>, vector<1x32x32xbf16>
    %171 = vector.shape_cast %170 : vector<1x32x32xbf16> to vector<32x32xbf16>
    %172 = arith.truncf %169 : vector<32x128xf32> to vector<32x128xbf16>
    %cst_79 = arith.constant dense<0.000000e+00> : vector<32x128xf32>
    %173 = tpu.matmul %171, %172, %cst_79 {dimension_numbers = #tpu.dot_dimension_numbers<[1], [0], [0], [1], [0, 0, 1, 1], [], []>} : vector<32x32xbf16>, vector<32x128xbf16>, vector<32x128xf32> -> vector<32x128xf32>
    %c1_80 = arith.constant 1 : index
    %c0_81 = arith.constant 0 : index
    %c0_82 = arith.constant 0 : index
    %174 = vector.load %arg8[%c1_80, %c0_81, %c0_82] : memref<3x32x1xf32, #tpu.memory_space<vmem>>, vector<1x32x1xf32>
    %175 = vector.shape_cast %174 : vector<1x32x1xf32> to vector<32x1xf32>
    %176 = vector.broadcast %175 : vector<32x1xf32> to vector<32x128xf32>
    %177 = arith.addf %173, %176 : vector<32x128xf32>
    %cst_83 = arith.constant 0.00999999977 : f32
    %178 = vector.broadcast %cst_83 : f32 to vector<32x128xf32>
    %179 = arith.mulf %178, %177 : vector<32x128xf32>
    %180 = arith.maximumf %177, %179 : vector<32x128xf32>
    %181 = arith.extf %123 : vector<32x128xbf16> to vector<32x128xf32>
    %182 = arith.addf %181, %180 : vector<32x128xf32>
    %183 = arith.truncf %182 : vector<32x128xf32> to vector<32x128xbf16>
    %c-9_i32 = arith.constant -9 : i32
    %184 = vector.broadcast %c-9_i32 : i32 to vector<128x128xi32>
    %185 = arith.addi %63, %184 : vector<128x128xi32>
    %c0_i32_84 = arith.constant 0 : i32
    %186 = vector.broadcast %c0_i32_84 : i32 to vector<128x128xi32>
    %187 = arith.subi %186, %185 : vector<128x128xi32>
    %188 = arith.maxsi %185, %187 : vector<128x128xi32>
    %c127_i32_85 = arith.constant 127 : i32
    %189 = vector.broadcast %c127_i32_85 : i32 to vector<128x128xi32>
    %190 = arith.subi %189, %188 : vector<128x128xi32>
    %c0_i32_86 = arith.constant 0 : i32
    %191 = vector.broadcast %c0_i32_86 : i32 to vector<128x128xi32>
    %192 = arith.subi %191, %190 : vector<128x128xi32>
    %193 = arith.maxsi %190, %192 : vector<128x128xi32>
    %c127_i32_87 = arith.constant 127 : i32
    %194 = vector.broadcast %c127_i32_87 : i32 to vector<128x128xi32>
    %195 = arith.subi %194, %193 : vector<128x128xi32>
    %196 = arith.cmpi eq, %62, %195 : vector<128x128xi32>
    %cst_88 = arith.constant 1.000000e+00 : f32
    %cst_89 = arith.constant 0.000000e+00 : f32
    %197 = vector.broadcast %cst_88 : f32 to vector<128x128xf32>
    %198 = vector.broadcast %cst_89 : f32 to vector<128x128xf32>
    %199 = arith.select %196, %197, %198 : vector<128x128xi1>, vector<128x128xf32>
    %200 = arith.truncf %199 : vector<128x128xf32> to vector<128x128xbf16>
    %cst_90 = arith.constant dense<0.000000e+00> : vector<32x128xf32>
    %201 = tpu.matmul %183, %200, %cst_90 {dimension_numbers = #tpu.dot_dimension_numbers<[1], [0], [0], [1], [0, 0, 1, 1], [], []>} : vector<32x128xbf16>, vector<128x128xbf16>, vector<32x128xf32> -> vector<32x128xf32>
    %202 = arith.truncf %201 : vector<32x128xf32> to vector<32x128xbf16>
    %c9_i32 = arith.constant 9 : i32
    %203 = vector.broadcast %c9_i32 : i32 to vector<128x128xi32>
    %204 = arith.addi %63, %203 : vector<128x128xi32>
    %c0_i32_91 = arith.constant 0 : i32
    %205 = vector.broadcast %c0_i32_91 : i32 to vector<128x128xi32>
    %206 = arith.subi %205, %204 : vector<128x128xi32>
    %207 = arith.maxsi %204, %206 : vector<128x128xi32>
    %c127_i32_92 = arith.constant 127 : i32
    %208 = vector.broadcast %c127_i32_92 : i32 to vector<128x128xi32>
    %209 = arith.subi %208, %207 : vector<128x128xi32>
    %c0_i32_93 = arith.constant 0 : i32
    %210 = vector.broadcast %c0_i32_93 : i32 to vector<128x128xi32>
    %211 = arith.subi %210, %209 : vector<128x128xi32>
    %212 = arith.maxsi %209, %211 : vector<128x128xi32>
    %c127_i32_94 = arith.constant 127 : i32
    %213 = vector.broadcast %c127_i32_94 : i32 to vector<128x128xi32>
    %214 = arith.subi %213, %212 : vector<128x128xi32>
    %215 = arith.cmpi eq, %62, %214 : vector<128x128xi32>
    %cst_95 = arith.constant 1.000000e+00 : f32
    %cst_96 = arith.constant 0.000000e+00 : f32
    %216 = vector.broadcast %cst_95 : f32 to vector<128x128xf32>
    %217 = vector.broadcast %cst_96 : f32 to vector<128x128xf32>
    %218 = arith.select %215, %216, %217 : vector<128x128xi1>, vector<128x128xf32>
    %219 = arith.truncf %218 : vector<128x128xf32> to vector<128x128xbf16>
    %cst_97 = arith.constant dense<0.000000e+00> : vector<32x128xf32>
    %220 = tpu.matmul %183, %219, %cst_97 {dimension_numbers = #tpu.dot_dimension_numbers<[1], [0], [0], [1], [0, 0, 1, 1], [], []>} : vector<32x128xbf16>, vector<128x128xbf16>, vector<32x128xf32> -> vector<32x128xf32>
    %221 = arith.truncf %220 : vector<32x128xf32> to vector<32x128xbf16>
    %222 = tpu.concatenate %202, %183, %221 in 0 : vector<32x128xbf16>, vector<32x128xbf16>, vector<32x128xbf16> -> vector<96x128xbf16>
    %c2 = arith.constant 2 : index
    %c0_98 = arith.constant 0 : index
    %c0_99 = arith.constant 0 : index
    %223 = vector.load %arg5[%c2, %c0_98, %c0_99] : memref<3x32x96xbf16, #tpu.memory_space<vmem>>, vector<1x32x96xbf16>
    %224 = vector.shape_cast %223 : vector<1x32x96xbf16> to vector<32x96xbf16>
    %cst_100 = arith.constant dense<0.000000e+00> : vector<32x128xf32>
    %225 = tpu.matmul %224, %222, %cst_100 {dimension_numbers = #tpu.dot_dimension_numbers<[1], [0], [0], [1], [0, 0, 1, 1], [], []>} : vector<32x96xbf16>, vector<96x128xbf16>, vector<32x128xf32> -> vector<32x128xf32>
    %c2_101 = arith.constant 2 : index
    %c0_102 = arith.constant 0 : index
    %c0_103 = arith.constant 0 : index
    %226 = vector.load %arg6[%c2_101, %c0_102, %c0_103] : memref<3x32x1xf32, #tpu.memory_space<vmem>>, vector<1x32x1xf32>
    %227 = vector.shape_cast %226 : vector<1x32x1xf32> to vector<32x1xf32>
    %228 = vector.broadcast %227 : vector<32x1xf32> to vector<32x128xf32>
    %229 = arith.addf %225, %228 : vector<32x128xf32>
    %c2_104 = arith.constant 2 : index
    %c0_105 = arith.constant 0 : index
    %c0_106 = arith.constant 0 : index
    %230 = vector.load %arg7[%c2_104, %c0_105, %c0_106] : memref<3x32x32xbf16, #tpu.memory_space<vmem>>, vector<1x32x32xbf16>
    %231 = vector.shape_cast %230 : vector<1x32x32xbf16> to vector<32x32xbf16>
    %232 = arith.truncf %229 : vector<32x128xf32> to vector<32x128xbf16>
    %cst_107 = arith.constant dense<0.000000e+00> : vector<32x128xf32>
    %233 = tpu.matmul %231, %232, %cst_107 {dimension_numbers = #tpu.dot_dimension_numbers<[1], [0], [0], [1], [0, 0, 1, 1], [], []>} : vector<32x32xbf16>, vector<32x128xbf16>, vector<32x128xf32> -> vector<32x128xf32>
    %c2_108 = arith.constant 2 : index
    %c0_109 = arith.constant 0 : index
    %c0_110 = arith.constant 0 : index
    %234 = vector.load %arg8[%c2_108, %c0_109, %c0_110] : memref<3x32x1xf32, #tpu.memory_space<vmem>>, vector<1x32x1xf32>
    %235 = vector.shape_cast %234 : vector<1x32x1xf32> to vector<32x1xf32>
    %236 = vector.broadcast %235 : vector<32x1xf32> to vector<32x128xf32>
    %237 = arith.addf %233, %236 : vector<32x128xf32>
    %cst_111 = arith.constant 0.00999999977 : f32
    %238 = vector.broadcast %cst_111 : f32 to vector<32x128xf32>
    %239 = arith.mulf %238, %237 : vector<32x128xf32>
    %240 = arith.maximumf %237, %239 : vector<32x128xf32>
    %241 = arith.extf %183 : vector<32x128xbf16> to vector<32x128xf32>
    %242 = arith.addf %241, %240 : vector<32x128xf32>
    %c0_112 = arith.constant 0 : index
    %c0_113 = arith.constant 0 : index
    %c0_114 = arith.constant 0 : index
    %243 = vector.load %arg9[%c0_112, %c0_113, %c0_114] : memref<1x32x128xf32, #tpu.memory_space<vmem>>, vector<1x32x128xf32>
    %244 = vector.shape_cast %243 : vector<1x32x128xf32> to vector<32x128xf32>
    %245 = vector.shape_cast %242 : vector<32x128xf32> to vector<1x32x128xf32>
    tpu.vector_store %arg9[%c0_112, %c0_113, %c0_114], %245 {strides = array<i32>} : memref<1x32x128xf32, #tpu.memory_space<vmem>>, vector<1x32x128xf32>,
    return
  }
  func.func @transform_0(%arg0: i32) -> (i32, i32, i32) {
    %c0_i32 = arith.constant 0 : i32
    %c0_i32_0 = arith.constant 0 : i32
    %c0_i32_1 = arith.constant 0 : i32
    return %arg0, %c0_i32, %c0_i32_0 : i32, i32, i32
  }
  func.func @transform_1(%arg0: i32) -> (i32, i32, i32) {
    %c0_i32 = arith.constant 0 : i32
    %c0_i32_0 = arith.constant 0 : i32
    %c0_i32_1 = arith.constant 0 : i32
    return %arg0, %c0_i32, %c0_i32_0 : i32, i32, i32
  }
  func.func @transform_2(%arg0: i32) -> (i32, i32) {
    %c0_i32 = arith.constant 0 : i32
    %c0_i32_0 = arith.constant 0 : i32
    %c0_i32_1 = arith.constant 0 : i32
    return %c0_i32, %c0_i32_0 : i32, i32
  }
  func.func @transform_3(%arg0: i32) -> (i32, i32) {
    %c0_i32 = arith.constant 0 : i32
    %c0_i32_0 = arith.constant 0 : i32
    %c0_i32_1 = arith.constant 0 : i32
    return %c0_i32, %c0_i32_0 : i32, i32
  }
  func.func @transform_4(%arg0: i32) -> (i32, i32, i32) {
    %c0_i32 = arith.constant 0 : i32
    %c0_i32_0 = arith.constant 0 : i32
    %c0_i32_1 = arith.constant 0 : i32
    %c0_i32_2 = arith.constant 0 : i32
    return %c0_i32, %c0_i32_0, %c0_i32_1 : i32, i32, i32
  }
  func.func @transform_5(%arg0: i32) -> (i32, i32, i32) {
    %c0_i32 = arith.constant 0 : i32
    %c0_i32_0 = arith.constant 0 : i32
    %c0_i32_1 = arith.constant 0 : i32
    %c0_i32_2 = arith.constant 0 : i32
    return %c0_i32, %c0_i32_0, %c0_i32_1 : i32, i32, i32
  }
  func.func @transform_6(%arg0: i32) -> (i32, i32, i32) {
    %c0_i32 = arith.constant 0 : i32
    %c0_i32_0 = arith.constant 0 : i32
    %c0_i32_1 = arith.constant 0 : i32
    %c0_i32_2 = arith.constant 0 : i32
    return %c0_i32, %c0_i32_0, %c0_i32_1 : i32, i32, i32
  }
  func.func @transform_7(%arg0: i32) -> (i32, i32, i32) {
    %c0_i32 = arith.constant 0 : i32
    %c0_i32_0 = arith.constant 0 : i32
    %c0_i32_1 = arith.constant 0 : i32
    %c0_i32_2 = arith.constant 0 : i32
    return %c0_i32, %c0_i32_0, %c0_i32_1 : i32, i32, i32
  }
  func.func @transform_8(%arg0: i32) -> (i32, i32, i32) {
    %c0_i32 = arith.constant 0 : i32
    %c0_i32_0 = arith.constant 0 : i32
    %c0_i32_1 = arith.constant 0 : i32
    return %arg0, %c0_i32, %c0_i32_0 : i32, i32, i32
  }
}

</mosaic_0001>

<bundles_post_ra>
// kernel: dec_block_forward.1
= control target key start
LH: loop header
LB: loop body
LE: loop exit
PB: predicated region body
PF: predicated region fallthrough
CT: control target
= control target key end

     0   :  { %s3349_s0 = inlined_call_operand.vmem [shape: f32[2,64,64], index: 0, kind: input, shape index: {}]   ;;  %s3350_s1 = inlined_call_operand.hbm [shape: f32[2,64,64], index: 1, kind: input, shape index: {}]   ;;  %s3351_s2 = inlined_call_operand.hbm [shape: bf16[32,256], index: 2, kind: input, shape index: {}]   ;;  %s3352_s3 = inlined_call_operand.vmem [shape: f32[32,1], index: 3, kind: input, shape index: {}]   ;;  %s3353_s4 = inlined_call_operand.vmem [shape: bf16[3,32,96], index: 4, kind: input, shape index: {}]   ;;  %s3354_s5 = inlined_call_operand.vmem [shape: f32[3,32,1], index: 5, kind: input, shape index: {}]   ;;  %s3355_s6 = inlined_call_operand.vmem [shape: bf16[3,32,32], index: 6, kind: input, shape index: {}]   ;;  %s3356_s7 = inlined_call_operand.vmem [shape: f32[3,32,1], index: 7, kind: input, shape index: {}]   ;;  %s3357_s8 = inlined_call_operand.hbm [shape: f32[2,32,128], index: 8, kind: output, shape index: {}]  }
   0x1   :  { %3360 = sst [smem:[#allocation12_spill]] %s3351_s2 }
   0x2   :  { %13 = vsyncpa [#allocation3], 0 }
   0x3   :  { %15 = vsyncpa [#allocation3 + $0x1], 0 }
   0x4   :  { %16 = vsyncpa [#allocation6], 0 }
   0x5   :  { %17 = vsyncpa [#allocation4], 0 }
   0x6   :  { %19 = vsyncpa [#allocation4 + $0x1], 0  ;;  %s2530_s27 = smov 0   ;;  %s2532_s28 = smov 0  }
   0x7   :  { %s2534_s29 = smov 0   ;;  %s2536_s30 = smov 0  }
   0x8 LB: > { %s2551_s9 = sadd.s32 4294967295, %s2476_s30   ;;  %s1983_s10 = sadd.s32 4294967294, %s2476_s30   ;;  %s2476_s30 = sphi %s2536_s30, %s3381_s30   ;;  %s2472_s29 = sphi %s2534_s29, %s3380_s29   ;;  %s2468_s28 = sphi %s2532_s28, %s3379_s28   ;;  %s2464_s27 = sphi %s2530_s27, %s3378_s27  }
   0x9   : > { %p71_p0 = scmp.ne.s32.totalorder %s2468_s28, %s2464_s27  ;;  %p72_p1 = scmp.eq.s32.totalorder %s2551_s9, 0 }
   0xa   : > { %p221_p2 = scmp.eq.s32.totalorder %s2551_s9, 1  ;;  %p227_p3 = scmp.eq.s32.totalorder %s1983_s10, 1 }
   0xb   : > { %p2560_p4 = por %p72_p1, %p71_p0  ;;  %p1984_p5 = scmp.ge.s32.totalorder %s2476_s30, 1 }
   0xc   : > { %p2565_p6 = por %p227_p3, %p71_p0  ;;  %p234_p7 = scmp.lt.s32.totalorder %s2476_s30, 3 }
   0xd   : > { %s3363_s2 = sld [smem:[#allocation12_spill]]  ;;  %s2478_s17 = smov [#allocation5]  }
   0xe   : > { %p2573_p8 = pnand %p1984_p5, %p234_p7  ;;  %s247_s18 = sshll.u32 %s2478_s17, 4  ;;  %s248_s18 = int_to_ptr.vmem [resolvable:$true] %s247_s18 }
   0xf   : > { %s2583_s19 = sadd.s32 1, %s2476_s30   ;;  %s3358_s20 = smov 128  }
  0x10   : > { %p2288_p9 = pneg %p2573_p8  ;;  %s3359_s21 = smov 8  }
  0x11   : > { %s55_s22 = ssub.s32 %s2476_s30, %s2583_s19  ;;  %s58_s23 = sadd.s32 1, %s2472_s29 }
  0x12   : > { %p2289_p10 = pnand %p2288_p9, %p72_p1  ;;  %p56_p12 = scmp.eq.s32.totalorder %s55_s22, 0 }
  0x13   : > { %s245_s15 = sshll.u32 %s3363_s2, 4  ;;  %p65_p13 = scmp.ne.s32.totalorder %s2472_s29, %s2468_s28  ;;  %s246_s15 = int_to_ptr.hbm [resolvable:$true] %s245_s15 }
  0x14   : > { %2291 = dma.hbm_to_vmem [thread:$0]  (!%p2289_p10), %s246_s15, 512, %s248_s18, [#allocation6], %s3358_s20, %s3358_s20, %s3359_s21  }
  0x15   : > { %p66_p0 = scmp.eq.s32.totalorder %s2476_s30, 0  ;;  %p2599_p3 = por %p221_p2, %p65_p13 }
  0x16   : > { %s2595_s24 = scalar_select %p56_p12, %s2472_s29, %s58_s23  }
  0x17   : > { %p2301_p5 = scmp.lt.s32.totalorder %s2476_s30, 2  ;;  %s284_s26 = sand.u32 1, %s2472_s29  }
  0x18   : > { %3365 = sst [smem:[#allocation11_spill]] %s2595_s24  ;;  %s2253_s10 = sshll.u32 %s2476_s30, 6 }
  0x19   : > { %p67_p7 = por %p66_p0, %p65_p13  ;;  %s1987_s13 = sshll.u32 %s284_s26, 6 }
  0x1a   : > { %s293_s15 = scalar_lea.hbm %s3350_s1, %s2253_s10  ;;  %s288_s22 = scalar_lea.vmem [#allocation2], %s1987_s13 }
  0x1b   : > { %s294_s18 = sshll.u32 %s293_s15, 4  ;;  %s296_s20 = sshll.u32 %s288_s22, 4  ;;  %s295_s18 = int_to_ptr.hbm [resolvable:$true] %s294_s18  ;;  %s297_s20 = int_to_ptr.vmem [resolvable:$true] %s296_s20 }
  0x1c   : > { %p2609_p9 = pnand %p2301_p5, %p67_p7  ;;  %s285_s21 = scalar_lea.sflag [#allocation3], %s284_s26 }
  0x1d   : > { %s2376_s2 = sshra.s32 %s295_s18, 4  ;;  %s2383_s13 = scalar_lea.hbm %s3350_s1, 128  ;;  %s2377_s2 = int_to_ptr.hbm [resolvable:$true] %s2376_s2 }
  0x1e   : > { %s2378_s24 = scalar_lea.hbm %s2377_s2, 64  ;;  %p2380_p10 = pneg %p2609_p9 }
  0x1f   : > { %p2379_p2 = scmp.ne.s32.totalorder %s2377_s2, %s2378_s24  ;;  %p2384_p0 = scmp.lt.s32.totalorder %s2377_s2, %s3350_s1 }
  0x20   : > { %p2385_p5 = scmp.lt.s32.totalorder %s2383_s13, %s2378_s24 }
  0x21   : > { %p2381_p12 = pnand %p2380_p10, %p2379_p2 }
  0x22   : > { %p2386_p7 = por %p2385_p5, %p2384_p0 }
  0x23   : > { %p2382_p13 = pneg %p2381_p12 }
  0x25   : > { %p2387_p11 = pnand %p2386_p7, %p2382_p13 }
  0x27   : > { %2390 = shalt.err (!%p2387_p11)
}
  0x28   : > { %s3368_s26 = smov 8   ;;  %s3369_s22 = smov 128  }
  0x29   : > { %2295 = dma.hbm_to_vmem [thread:$0]  (!%p2609_p9), %s295_s18, 1024, %s297_s20, %s285_s21, %s3369_s22, %s3369_s22, %s3368_s26  }
  0x2a   : > { %308 = sbr.rel (%p2573_p8) target bundleno = 1958 (0x7a6), region = 52  ;;  %s2629_s10 = sand.u32 (!%p2573_p8), 1, %s2468_s28  }
  0x2b   : > { %s1991_s2 = sshll.u32 (!%p2573_p8), %s2629_s10, 6  ;;  %s311_s24 = scalar_lea.sflag (!%p2573_p8), [#allocation3], %s2629_s10 }
  0x2c   : > { %s2633_s14 = scalar_lea.vmem (!%p2573_p8), [#allocation2], %s1991_s2 }
  0x2f   : > { %2451 = dma.done.wait (%p2560_p4), %s311_s24, 1024  }
  0x30   : > { %2453 = vsyncadd (%p2560_p4), %s311_s24, 4294966272  ;;  %v392_v0 = vlaneseq }
  0x31   : > { %2455 = dma.done.wait (%p72_p1), [#allocation6], 512  }
  0x32   : > { %2457 = vsyncadd (%p72_p1), [#allocation6], 4294966784  ;;  %p358_p8 = scmp.lt.s32.totalorder %s2551_s9, 1  ;;  %v2644_v1 = vshrl.u32 %v392_v0, 7  ;;  %v2659_v6 = vand.u32 127, %v392_v0  ;;  %v372_v33 = vld [vmem:[%s2633_s14] sm:$0xff] }
  0x33   : > { %v2481_v26 = vmov 1.0|1.0   ;;  %v373_v35 = vld [vmem:[%s2633_s14 + $0x8] sm:$0xff]  ;;  %v378_v40 = vld [vmem:[%s2633_s14 + $0x30] sm:$0xff]  ;;  %v379_v41 = vld [vmem:[%s2633_s14 + $0x38] sm:$0xff]  ;;  %s2271_s21 = sshll.u32 %s2551_s9, 5 }
  0x34   : > { %s359_s16 = scalar_select %p358_p8, %s2551_s9, 1  ;;  %v2648_v2 = vadd.s32 48, %v2644_v1  ;;  %v2651_v3 = vadd.s32 56, %v2644_v1  ;;  %v2654_v4 = vadd.s32 32, %v2644_v1  ;;  %v2657_v5 = vadd.s32 40, %v2644_v1  ;;  %v374_v62 = vld [vmem:[%s2633_s14 + $0x10] sm:$0xff] }
  0x35   : > { %v2662_v7 = vadd.s32 16, %v2644_v1  ;;  %v2665_v8 = vadd.s32 24, %v2644_v1  ;;  %v2668_v9 = vadd.s32 8, %v2644_v1  ;;  %v2689_v16 = vmul.u32 2, %v2644_v1  ;;  %v375_v63 = vld [vmem:[%s2633_s14 + $0x18] sm:$0xff]  ;;  %s1884_s13 = scalar_lea.hbm %s3357_s8, %s2271_s21  ;;  %s1873_s9 = scalar_lea.sflag [#allocation4], %s2629_s10 }
  0x36   : > { %v2671_v10 = vmul.u32 2, %v2648_v2  ;;  %v2674_v11 = vmul.u32 2, %v2651_v3  ;;  %v2677_v12 = vmul.u32 2, %v2654_v4  ;;  %v2680_v13 = vmul.u32 2, %v2657_v5  ;;  %s2254_s11 = sshll.u32 %s359_s16, 6  ;;  %s1887_s15 = sshll.u32 %s1884_s13, 4  ;;  %s1888_s15 = int_to_ptr.hbm [resolvable:$true] %s1887_s15 }
  0x37   : > { %v2683_v14 = vmul.u32 2, %v2662_v7  ;;  %v2686_v15 = vmul.u32 2, %v2665_v8  ;;  %v2692_v17 = vmul.u32 2, %v2668_v9  ;;  %s2705_s18 = scalar_lea.vmem %s3349_s0, %s2254_s11  ;;  %v489_v31 = vadd.s32 1, %v2689_v16  ;;  %s1993_s11 = sshll.u32 %s2629_s10, 5 }
  0x38   : > { %v495_v18 = vadd.s32 1, %v2671_v10  ;;  %v496_v19 = vadd.s32 1, %v2674_v11  ;;  %v493_v20 = vadd.s32 1, %v2677_v12  ;;  %v494_v21 = vadd.s32 1, %v2680_v13  ;;  %v364_v30 = vld [vmem:[%s2705_s18] sm:$0xff]  ;;  %v365_v32 = vld [vmem:[%s2705_s18 + $0x8] sm:$0xff] }
  0x39   : > { %v417_v22 = vadd.s32 2, %v2671_v10  ;;  %v418_v23 = vadd.s32 2, %v2674_v11  ;;  %v491_v24 = vadd.s32 1, %v2683_v14  ;;  %v492_v25 = vadd.s32 1, %v2686_v15  ;;  %v370_v36 = vld [vmem:[%s2705_s18 + $0x30] sm:$0xff]  ;;  %v371_v37 = vld [vmem:[%s2705_s18 + $0x38] sm:$0xff] }
  0x3a   : > { %vm503_vm0 = vcmp.eq.s32.totalorder %v2659_v6, %v495_v18  ;;  %vm504_vm1 = vcmp.eq.s32.totalorder %v2659_v6, %v496_v19  ;;  %vm501_vm2 = vcmp.eq.s32.totalorder %v2659_v6, %v493_v20  ;;  %vm502_vm3 = vcmp.eq.s32.totalorder %v2659_v6, %v494_v21  ;;  %v366_v60 = vld [vmem:[%s2705_s18 + $0x10] sm:$0xff]  ;;  %v367_v61 = vld [vmem:[%s2705_s18 + $0x18] sm:$0xff]  ;;  %s357_s20 = scalar_lea.vmem [#allocation7], %s1993_s11  ;;  %s2420_s26 = sshra.s32 %s1888_s15, 4  ;;  %s2421_s26 = int_to_ptr.hbm [resolvable:$true] %s2420_s26 }
  0x3b   : > { %vm2008_vm4 = vmpackc.low %vm504_vm1, %vm503_vm0  ;;  %vm425_vm5 = vcmp.eq.s32.totalorder %v2659_v6, %v417_v22  ;;  %vm426_vm6 = vcmp.eq.s32.totalorder %v2659_v6, %v418_v23  ;;  %v415_v28 = vadd.s32 2, %v2677_v12  ;;  %v416_v29 = vadd.s32 2, %v2680_v13  ;;  %s1885_s17 = sshll.u32 %s357_s20, 4  ;;  %s2422_s22 = scalar_lea.hbm %s2421_s26, 32  ;;  %s1886_s17 = int_to_ptr.vmem [resolvable:$true] %s1885_s17 }
  0x3c   : > { %2009 = vmatpush.bf16.msk.msra.mxu1 %vm2008_vm4, %v2481_v26  ;;  %2276 = vmatpush.bf16.msk.msra.mxu3 %vm2008_vm4, %v2481_v26  ;;  %vm2715_vm7 = vmpackc.low %vm502_vm3, %vm501_vm2  ;;  %vm499_vm9 = vcmp.eq.s32.totalorder %v2659_v6, %v491_v24  ;;  %vm500_vm10 = vcmp.eq.s32.totalorder %v2659_v6, %v492_v25  ;;  %v490_v34 = vadd.s32 1, %v2692_v17  ;;  %v413_v38 = vadd.s32 2, %v2683_v14  ;;  %p2423_p1 = scmp.ne.s32.totalorder %s2421_s26, %s2422_s22  ;;  %p2427_p9 = scmp.lt.s32.totalorder %s2421_s26, %s3357_s8 }
  0x3d   : > { %vm1996_vm8 = vmpackc.low %vm426_vm6, %vm425_vm5  ;;  %vm423_vm11 = vcmp.eq.s32.totalorder %v2659_v6, %v415_v28  ;;  %vm424_vm12 = vcmp.eq.s32.totalorder %v2659_v6, %v416_v29  ;;  %v414_v42 = vadd.s32 2, %v2686_v15  ;;  %v617_v43 = vadd.s32 4294967295, %v2671_v10 }
  0x3e   : > { %2272 = vmatpush.bf16.msk.msra.mxu2 %vm1996_vm8, %v2481_v26  ;;  %1997 = vmatpush.bf16.msk.msra.mxu0 %vm1996_vm8, %v2481_v26  ;;  %vm2736_vm13 = vmpackc.low %vm424_vm12, %vm423_vm11  ;;  %vm421_vm14 = vcmp.eq.s32.totalorder %v2659_v6, %v413_v38  ;;  %v618_v44 = vadd.s32 4294967295, %v2674_v11  ;;  %v411_v45 = vadd.s32 2, %v2689_v16  ;;  %v412_v46 = vadd.s32 2, %v2692_v17  ;;  %p2424_p4 = pnand %p2423_p1, %p2599_p3 }
  0x3f   : > { %vm2758_vm15 = vmpackc.low %vm500_vm10, %vm499_vm9  ;;  %vm497_vm0 = vcmp.eq.s32.totalorder %v2659_v6, %v489_v31  ;;  %v380_v48 = vadd.f32 %v372_v33, %v364_v30  ;;  %v381_v49 = vadd.f32 %v373_v35, %v365_v32  ;;  %vm422_vm1 = vcmp.eq.s32.totalorder %v2659_v6, %v414_v42  ;;  %v776_v35 = vld [vmem:[%s3352_s3] sm:$0xff] }
  0x40   : > { %2011 = vmatpush.bf16.msk.msra.mxu1 %vm2715_vm7, %v2481_v26  ;;  %2277 = vmatpush.bf16.msk.msra.mxu3 %vm2715_vm7, %v2481_v26  ;;  %vm498_vm2 = vcmp.eq.s32.totalorder %v2659_v6, %v490_v34  ;;  %v386_v50 = vadd.f32 %v378_v40, %v370_v36  ;;  %v387_v51 = vadd.f32 %v379_v41, %v371_v37  ;;  %vm2000_vm3 = vmpackc.low %vm422_vm1, %vm421_vm14  ;;  %v615_v52 = vadd.s32 4294967295, %v2677_v12  ;;  %v777_v40 = vld [vmem:[%s3352_s3 + $0x8] sm:$0xff]  ;;  %p2425_p11 = pneg %p2424_p4 }
  0x41   : > { %vm625_vm4 = vcmp.eq.s32.totalorder %v2659_v6, %v617_v43  ;;  %vm626_vm5 = vcmp.eq.s32.totalorder %v2659_v6, %v618_v44  ;;  %v616_v53 = vadd.s32 4294967295, %v2680_v13  ;;  %vm419_vm6 = vcmp.eq.s32.totalorder %v2659_v6, %v411_v45  ;;  %vm2014_vm8 = vmpackc.low %vm498_vm2, %vm497_vm0  ;;  %v1062_v45 = vld [vmem:[%s3354_s5] sm:$0xff] }
  0x42   : > { %2273 = vmatpush.bf16.msk.msra.mxu2 %vm2736_vm13, %v2481_v26  ;;  %1999 = vmatpush.bf16.msk.msra.mxu0 %vm2736_vm13, %v2481_v26  ;;  %vm420_vm7 = vcmp.eq.s32.totalorder %v2659_v6, %v412_v46  ;;  %v388_v54 = vpack.c.bf16 %v381_v49, %v380_v48  ;;  %v2785_v55 = vpack.c.bf16 %v387_v51, %v386_v50  ;;  %vm2032_vm9 = vmpackc.low %vm626_vm5, %vm625_vm4  ;;  %v613_v56 = vadd.s32 4294967295, %v2683_v14 }
  0x43   : > { %vm560_vm10 = vcmp.eq.s32.totalorder %v2659_v6, %v2671_v10  ;;  %vm561_vm11 = vcmp.eq.s32.totalorder %v2659_v6, %v2674_v11  ;;  %vm2002_vm12 = vmpackc.low %vm420_vm7, %vm419_vm6  ;;  %vm623_vm13 = vcmp.eq.s32.totalorder %v2659_v6, %v615_v52  ;;  %vm624_vm14 = vcmp.eq.s32.totalorder %v2659_v6, %v616_v53 }
  0x44   : > { %2013 = vmatpush.bf16.msk.msra.mxu1 %vm2758_vm15, %v2481_v26  ;;  %2278 = vmatpush.bf16.msk.msra.mxu3 %vm2758_vm15, %v2481_v26  ;;  %v614_v57 = vadd.s32 4294967295, %v2686_v15  ;;  %vm439_vm15 = vcmask 523264   ;;  %vm2020_vm0 = vmpackc.low %vm561_vm11, %vm560_vm10  ;;  %vm558_vm2 = vcmp.eq.s32.totalorder %v2659_v6, %v2677_v12  ;;  %vm621_vm4 = vcmp.eq.s32.totalorder %v2659_v6, %v613_v56  ;;  %v368_v12 = vld [vmem:[%s2705_s18 + $0x20] sm:$0xff]  ;;  %v1129_v56 = vld [vmem:[%s3356_s7 + $0x8] sm:$0xff] }
  0x45   : > { %vm2034_vm1 = vmpackc.low %vm624_vm14, %vm623_vm13  ;;  %v611_v58 = vadd.s32 4294967295, %v2689_v16  ;;  %v612_v59 = vadd.s32 4294967295, %v2692_v17  ;;  %vm554_vm14 = vcmp.eq.s32.totalorder %v2659_v6, %v2689_v16  ;;  %v382_v0 = vadd.f32 %v374_v62, %v366_v60 }
  0x46   : > { %2274 = vmatpush.bf16.msk.msra.mxu2 %vm2000_vm3, %v2481_v26  ;;  %2001 = vmatpush.bf16.msk.msra.mxu0 %vm2000_vm3, %v2481_v26  ;;  %vm559_vm3 = vcmp.eq.s32.totalorder %v2659_v6, %v2680_v13  ;;  %vm622_vm5 = vcmp.eq.s32.totalorder %v2659_v6, %v614_v57  ;;  %v383_v10 = vadd.f32 %v375_v63, %v367_v61  ;;  %v369_v13 = vld [vmem:[%s2705_s18 + $0x28] sm:$0xff]  ;;  %v2482_v36 = vmov 0  }
  0x47   : > { %vm2022_vm6 = vmpackc.low %vm559_vm3, %vm558_vm2  ;;  %vm619_vm10 = vcmp.eq.s32.totalorder %v2659_v6, %v611_v58  ;;  %vm620_vm11 = vcmp.eq.s32.totalorder %v2659_v6, %v612_v59  ;;  %2343 = vset.pattern.permute.xlu0 %v2482_v36  ;;  %2344 = vset.pattern.permute.xlu1 %v2482_v36 }
  0x48   : > { %2015 = vmatpush.bf16.msk.msra.mxu1 %vm2014_vm8, %v2481_v26  ;;  %2279 = vmatpush.bf16.msk.msra.mxu3 %vm2014_vm8, %v2481_v26  ;;  %vm2036_vm7 = vmpackc.low %vm622_vm5, %vm621_vm4  ;;  %vm556_vm8 = vcmp.eq.s32.totalorder %v2659_v6, %v2683_v14  ;;  %v389_v11 = vpack.c.bf16 %v383_v10, %v382_v0  ;;  %v376_v14 = vld [vmem:[%s2633_s14 + $0x20] sm:$0xff] }
  0x49   : > { %vm2038_vm13 = vmpackc.low %vm620_vm11, %vm619_vm10  ;;  %v384_v16 = vadd.f32 %v376_v14, %v368_v12  ;;  %782 = vperm.xlu0 %2343, %v776_v35   ;;  %2345 = vset.pattern.permute.xlu2 %v2482_v36  ;;  %v2149_v35 = vld [vmem:[%s3354_s5 + $0x28] sm:$0xff] }
  0x4a   : > { %2275 = vmatpush.bf16.msk.msra.mxu2 %vm2002_vm12, %v2481_v26  ;;  %2003 = vmatpush.bf16.msk.msra.mxu0 %vm2002_vm12, %v2481_v26 }
  0x4b   : > { %2016 = vmatmul.msk.bf16.vlgmr.msra.gmra.mxu1 %vm439_vm15, %v388_v54  ;;  %2019 = vmatmul.msk.bf16.vlgmr.msra.gmra.mxu3 %vm439_vm15, %v2785_v55 }
  0x4c   : > { %2033 = vmatpush.bf16.msk.msrb.mxu3 %vm2032_vm9, %v2481_v26  ;;  %vm557_vm9 = vcmp.eq.s32.totalorder %v2659_v6, %v2686_v15  ;;  %v377_v15 = vld [vmem:[%s2633_s14 + $0x28] sm:$0xff]  ;;  %s2426_s14 = scalar_lea.hbm %s3357_s8, 64 }
  0x4d   : > { %2007 = vmatmul.msk.bf16.vlgmr.msra.gmra.mxu2 %vm439_vm15, %v2785_v55  ;;  %2004 = vmatmul.msk.bf16.vlgmr.msra.gmra.mxu0 %vm439_vm15, %v388_v54  ;;  %vm2024_vm12 = vmpackc.low %vm557_vm9, %vm556_vm8  ;;  %p2428_p2 = scmp.lt.s32.totalorder %s2426_s14, %s2422_s22 }
  0x4e   : > { %2021 = vmatpush.bf16.msk.msrb.mxu2 %vm2020_vm0, %v2481_v26  ;;  %vm555_vm0 = vcmp.eq.s32.totalorder %v2659_v6, %v2692_v17  ;;  %v385_v17 = vadd.f32 %v377_v15, %v369_v13 }
  0x4f   : > { %p2429_p10 = por %p2428_p2, %p2427_p9 }
  0x50   : > { %2035 = vmatpush.bf16.msk.msrb.mxu3 %vm2034_vm1, %v2481_v26  ;;  %vm2026_vm1 = vmpackc.low %vm555_vm0, %vm554_vm14  ;;  %v390_v18 = vpack.c.bf16 %v385_v17, %v384_v16  ;;  %v779_v16 = vld [vmem:[%s3352_s3 + $0x18] sm:$0xff]  ;;  %v2150_v17 = vld [vmem:[%s3354_s5 + $0x30] sm:$0xff] }
  0x51   : > { %787 = vperm.xlu0 %2343, %v777_v40   ;;  %p2430_p12 = pnand %p2429_p10, %p2425_p11 }
  0x52   : > { %2023 = vmatpush.bf16.msk.msrb.mxu2 %vm2022_vm6, %v2481_v26 }
  0x54   : > { %2037 = vmatpush.bf16.msk.msrb.mxu3 %vm2036_vm7, %v2481_v26 }
  0x56   : > { %2025 = vmatpush.bf16.msk.msrb.mxu2 %vm2024_vm12, %v2481_v26 }
  0x58   : > { %2039 = vmatpush.bf16.msk.msrb.mxu3 %vm2038_vm13, %v2481_v26 }
  0x59   : > { %1068 = vperm.xlu0 %2343, %v1062_v45  }
  0x5a   : > { %2027 = vmatpush.bf16.msk.msrb.mxu2 %vm2026_vm1, %v2481_v26 }
  0x5b   : > { %2017 = vmatmul.msk.bf16.gmra.mxu1 %vm439_vm15, %v389_v11  ;;  %2040 = vmatmul.msk.bf16.vlgmr.msrb.gmra.mxu3 %vm439_vm15, %v388_v54 }
  0x5d   : > { %2028 = vmatmul.msk.bf16.vlgmr.msrb.gmra.mxu2 %vm439_vm15, %v388_v54  ;;  %2005 = vmatmul.msk.bf16.gmra.mxu0 %vm439_vm15, %v389_v11 }
  0x61   : > { %1139 = vperm.xlu0 %2343, %v1129_v56   ;;  %v2151_v56 = vld [vmem:[%s3354_s5 + $0x38] sm:$0xff] }
  0x69   : > { %1410 = vperm.xlu0 %2343, %v2150_v17   ;;  %v2234_v17 = vld [vmem:[%s3356_s7 + $0x40] sm:$0xff] }
  0x6b   : > { %2018 = vmatmul.msk.bf16.gmra.mxu1 %vm439_vm15, %v390_v18  ;;  %2041 = vmatmul.msk.bf16.gmra.mxu3 %vm439_vm15, %v389_v11 }
  0x6d   : > { %2029 = vmatmul.msk.bf16.gmra.mxu2 %vm439_vm15, %v389_v11  ;;  %2006 = vmatmul.msk.bf16.gmra.mxu0 %vm439_vm15, %v390_v18 }
  0x71   : > { %1405 = vperm.xlu0 %2343, %v2149_v35  }
  0x7b   : > { %2042 = vmatmul.msk.bf16.gmra.mxu3 %vm439_vm15, %v390_v18 }
  0x7d   : > { %2030 = vmatmul.msk.bf16.gmra.mxu2 %vm439_vm15, %v390_v18 }
  0x8b   : > { %2043 = vmatmul.msk.bf16.gmra.mxu3 %vm439_vm15, %v2785_v55 }
  0x8d   : > { %2031 = vmatmul.msk.bf16.gmra.mxu2 %vm439_vm15, %v2785_v55  ;;  %v778_v55 = vld [vmem:[%s3352_s3 + $0x10] sm:$0xff] }
  0x8e   : > { %792 = vperm.xlu1 %2344, %v778_v55  }
  0x96   : > { %797 = vperm.xlu1 %2344, %v779_v16   ;;  %v2166_v16 = vld [vmem:[%s3356_s7 + $0x20] sm:$0xff] }
  0xc8   : > { %v526_v19 = vpop.f32.mrf.mxu1 }
  0xc9   : > { %v546_v60 = vpack.c.bf16 %v526_v19, %v526_v19 }
  0xca   : > { %v2855_v20 = vpop.f32.mrf.mxu0 }
  0xcb   : > { %v708_v12 = vunpack.c.l.b16 %v546_v60  ;;  %v481_v40 = vpack.c.bf16 %v2855_v20, %v2855_v20 }
  0xce   : > { %v541_v21 = vpop.f32.mrf.mxu3 }
  0xcf   : > { %v552_v25 = vpack.c.bf16 %v541_v21, %v541_v21 }
  0xd0   : > { %v528_v22 = vpop.f32.mrf.mxu1  ;;  %v2857_v23 = vpop.f32.mrf.mxu2 }
  0xd1   : > { %v714_v31 = vunpack.c.l.b16 %v552_v25  ;;  %v547_v61 = vpack.c.bf16 %v528_v22, %v528_v22  ;;  %v487_v14 = vpack.c.bf16 %v2857_v23, %v2857_v23 }
  0xd2   : > { %v2859_v24 = vpop.f32.mrf.mxu0 }
  0xd3   : > { %v709_v13 = vunpack.c.l.b16 %v547_v61  ;;  %v690_v21 = vunpack.c.l.b16 %v487_v14 }
  0xd5   : > { %v716_v25 = vpack.c.b16 %v709_v13, %v708_v12 }
  0xd6   : > { %v543_v27 = vpop.f32.mrf.mxu3 }
  0xd7   : > { %v553_v28 = vpack.c.bf16 %v543_v27, %v543_v27 }
  0xd8   : > { %v531_v29 = vpop.f32.mrf.mxu1  ;;  %v478_v30 = vpop.f32.mrf.mxu2 }
  0xd9   : > { %v715_v32 = vunpack.c.l.b16 %v553_v28  ;;  %v548_v49 = vpack.c.bf16 %v531_v29, %v531_v29  ;;  %v488_v15 = vpack.c.bf16 %v478_v30, %v478_v30 }
  0xda   : > { %v2861_v34 = vpop.f32.mrf.mxu0 }
  0xdb   : > { %v719_v33 = vpack.c.b16 %v715_v32, %v714_v31  ;;  %v710_v57 = vunpack.c.l.b16 %v548_v49  ;;  %v691_v22 = vunpack.c.l.b16 %v488_v15  ;;  %v483_v23 = vpack.c.bf16 %v2861_v34, %v2861_v34  ;;  %v1063_v32 = vld [vmem:[%s3354_s5 + $0x8] sm:$0xff]  ;;  %v1130_v49 = vld [vmem:[%s3356_s7 + $0x10] sm:$0xff] }
  0xdc   : > { %1073 = vperm.xlu1 %2344, %v1063_v32  }
  0xdd   : > { %820 = vmatpush.bf16.msrb.mxu0 %v719_v33  ;;  %v695_v31 = vpack.c.b16 %v691_v22, %v690_v21  ;;  %v686_v36 = vunpack.c.l.b16 %v483_v23  ;;  %v2258_v22 = vld [vmem:[#allocation5 + $0x14] sm:$0xf0] }
  0xde   : > { %v2866_v37 = vpop.f32.mrf.mxu3 }
  0xe0   : > { %v533_v38 = vpop.f32.mrf.mxu1  ;;  %v2868_v39 = vpop.f32.mrf.mxu2 }
  0xe1   : > { %v549_v50 = vpack.c.bf16 %v533_v38, %v533_v38 }
  0xe2   : > { %v468_v41 = vpop.f32.mrf.mxu0 }
  0xe3   : > { %v711_v58 = vunpack.c.l.b16 %v549_v50  ;;  %v484_v28 = vpack.c.bf16 %v468_v41, %v468_v41  ;;  %v482_v41 = vpack.c.bf16 %v2859_v24, %v2859_v24  ;;  %v2168_v50 = vld [vmem:[%s3356_s7 + $0x30] sm:$0xff] }
  0xe4   : > { %1144 = vperm.xlu1 %2344, %v1130_v49   ;;  %1477 = vperm.xlu0 %2343, %v2168_v50  }
  0xe5   : > { %v717_v0 = vpack.c.b16 %v711_v58, %v710_v57  ;;  %v687_v38 = vunpack.c.l.b16 %v484_v28  ;;  %v2219_v57 = vld [vmem:[%s3354_s5 + $0x58] sm:$0xff]  ;;  %v668_v28 = vpack.c.bf16 %v2866_v37, %v2866_v37 }
  0xe6   : > { %v2873_v42 = vpop.f32.mrf.mxu3 }
  0xe7   : > { %v693_v45 = vpack.c.b16 %v687_v38, %v686_v36  ;;  %v756_v38 = vunpack.c.l.b16 %v668_v28 }
  0xe8   : > { %v536_v43 = vpop.f32.mrf.mxu1  ;;  %v2875_v44 = vpop.f32.mrf.mxu2 }
  0xe9   : > { %v550_v46 = vpack.c.bf16 %v536_v43, %v536_v43 }
  0xea   : > { %v471_v48 = vpop.f32.mrf.mxu0 }
  0xeb   : > { %v712_v53 = vunpack.c.l.b16 %v550_v46  ;;  %v485_v18 = vpack.c.bf16 %v471_v48, %v471_v48  ;;  %v684_v46 = vunpack.c.l.b16 %v481_v40  ;;  %v685_v48 = vunpack.c.l.b16 %v482_v41 }
  0xec   : > { %1415 = vperm.xlu1 %2344, %v2151_v56   ;;  %1747 = vperm.xlu0 %2343, %v2219_v57   ;;  %v2255_v57 = vld [vmem:[#allocation5 + $0x4] sm:$0xf] }
  0xed   : > { %v688_v29 = vunpack.c.l.b16 %v485_v18  ;;  %v2054_v18 = vld [vmem:[#allocation5 + $0x10] sm:$0xf] }
  0xee   : > { %v2880_v47 = vpop.f32.mrf.mxu3 }
  0xf0   : > { %v538_v51 = vpop.f32.mrf.mxu1  ;;  %v2882_v52 = vpop.f32.mrf.mxu2 }
  0xf1   : > { %v551_v54 = vpack.c.bf16 %v538_v51, %v538_v51  ;;  %v692_v51 = vpack.c.b16 %v685_v48, %v684_v46 }
  0xf2   : > { %v473_v11 = vpop.f32.mrf.mxu0 }
  0xf3   : > { %v713_v59 = vunpack.c.l.b16 %v551_v54  ;;  %v486_v19 = vpack.c.bf16 %v473_v11, %v473_v11  ;;  %v2256_v54 = vld [vmem:[#allocation5 + $0x4] sm:$0xf0] }
  0xf4   : > { %1467 = vperm.xlu1 %2344, %v2166_v16   ;;  %1799 = vperm.xlu0 %2343, %v2234_v17   ;;  %v878_v16 = vadd.s32 4294967295, %v2659_v6  ;;  %v2975_v17 = vadd.s32 96, %v2644_v1 }
  0xf5   : > { %v718_v62 = vpack.c.b16 %v713_v59, %v712_v53  ;;  %v689_v30 = vunpack.c.l.b16 %v486_v19  ;;  %v2046_v53 = vld [vmem:[#allocation5] sm:$0xf]  ;;  %v670_v19 = vpack.c.bf16 %v2880_v47, %v2880_v47  ;;  %v2169_v47 = vld [vmem:[%s3356_s7 + $0x38] sm:$0xff] }
  0xf6   : > { %v2890_v63 = vpop.f32.mrf.mxu3  ;;  %v2047_v55 = vor.u32 %v2256_v54, %v2046_v53 }
  0xf7   : > { %821 = vmatpush.bf16.msrb.mxu0 %v718_v62  ;;  %v694_v34 = vpack.c.b16 %v689_v30, %v688_v29  ;;  %v671_v13 = vpack.c.bf16 %v2890_v63, %v2890_v63  ;;  %v669_v63 = vpack.c.bf16 %v2873_v42, %v2873_v42  ;;  %v758_v30 = vunpack.c.l.b16 %v670_v19  ;;  %v2237_v42 = vld [vmem:[%s3356_s7 + $0x58] sm:$0xff] }
  0xf8   : > { %v2892_v10 = vpop.f32.mrf.mxu2  ;;  %v879_v19 = vsub.s32 0, %v878_v16 }
  0xf9   : > { %v606_v46 = vpack.c.bf16 %v2892_v10, %v2892_v10  ;;  %v2235_v10 = vld [vmem:[%s3356_s7 + $0x48] sm:$0xff] }
  0xfa   : > { %vm880_vm7 = vcmp.gt.s32.totalorder %v878_v16, %v879_v19 }
  0xfb   : > { %822 = vmatpush.bf16.msrb.mxu0 %v717_v0 }
  0xfc   : > { %1482 = vperm.xlu1 %2344, %v2169_v47   ;;  %1814 = vperm.xlu0 %2343, %v2237_v42   ;;  %v783_v47 = vpop.permute.xlu0 %782 }
  0xfe   : > { %v658_v27 = vpop.f32.mrf.mxu3 }
  0xff   : > { %823 = vmatpush.bf16.msrb.mxu0 %v716_v25  ;;  %v672_v0 = vpack.c.bf16 %v658_v27, %v658_v27  ;;  %v2055_v25 = vor.u32 %v2258_v22, %v2054_v18  ;;  %v759_v27 = vunpack.c.l.b16 %v671_v13  ;;  %v2969_v13 = vadd.s32 120, %v2644_v1 }
 0x100   : > { %v2907_v33 = vpop.f32.mrf.mxu2  ;;  %v2978_v18 = vadd.s32 104, %v2644_v1 }
 0x101   : > { %v760_v21 = vunpack.c.l.b16 %v672_v0  ;;  %v765_v36 = vpack.c.b16 %v759_v27, %v758_v30  ;;  %v2994_v27 = vadd.s32 88, %v2644_v1  ;;  %v3014_v30 = vadd.s32 72, %v2644_v1 }
 0x103   : > { %824 = vmatpush.bf16.msrb.mxu0 %v695_v31  ;;  %v757_v31 = vunpack.c.l.b16 %v669_v63 }
 0x105   : > { %v764_v37 = vpack.c.b16 %v757_v31, %v756_v38 }
 0x106   : > { %v660_v43 = vpop.f32.mrf.mxu3 }
 0x107   : > { %825 = vmatpush.bf16.msrb.mxu0 %v694_v34  ;;  %v673_v61 = vpack.c.bf16 %v660_v43, %v660_v43  ;;  %v607_v34 = vpack.c.bf16 %v2907_v33, %v2907_v33  ;;  %v603_v33 = vpack.c.bf16 %v2868_v39, %v2868_v39 }
 0x108   : > { %v595_v20 = vpop.f32.mrf.mxu2 }
 0x109   : > { %v761_v14 = vunpack.c.l.b16 %v673_v61  ;;  %v608_v40 = vpack.c.bf16 %v595_v20, %v595_v20  ;;  %v736_v48 = vunpack.c.l.b16 %v607_v34  ;;  %v604_v20 = vpack.c.bf16 %v2875_v44, %v2875_v44  ;;  %v2257_v44 = vld [vmem:[#allocation5 + $0x14] sm:$0xf] }
 0x10a   : > { %v732_v54 = vunpack.c.l.b16 %v603_v33 }
 0x10b   : > { %826 = vmatpush.bf16.msrb.mxu0 %v693_v45  ;;  %v766_v23 = vpack.c.b16 %v761_v14, %v760_v21  ;;  %v605_v45 = vpack.c.bf16 %v2882_v52, %v2882_v52  ;;  %v737_v49 = vunpack.c.l.b16 %v608_v40  ;;  %v735_v52 = vunpack.c.l.b16 %v606_v46 }
 0x10c   : > { %v881_v21 = vsel %vm880_vm7, %v878_v16, %v879_v19  ;;  %v1064_v19 = vld [vmem:[%s3354_s5 + $0x10] sm:$0xff] }
 0x10d   : > { %v742_v53 = vpack.c.b16 %v737_v49, %v736_v48  ;;  %v882_v22 = vsub.s32 127, %v881_v21  ;;  %v793_v48 = vpop.permute.xlu1 %792  ;;  %1078 = vperm.xlu2 %2345, %v1064_v19   ;;  %v1292_v19 = vadd.s32 3, %v2659_v6 }
 0x10e   : > { %v663_v24 = vpop.f32.mrf.mxu3 }
 0x10f   : > { %827 = vmatpush.bf16.msrb.mxu0 %v692_v51  ;;  %v674_v58 = vpack.c.bf16 %v663_v24, %v663_v24  ;;  %v2216_v51 = vld [vmem:[%s3354_s5 + $0x40] sm:$0xff]  ;;  %v734_v24 = vunpack.c.l.b16 %v605_v45  ;;  %v883_v63 = vsub.s32 0, %v882_v22 }
 0x110   : > { %v598_v59 = vpop.f32.mrf.mxu2  ;;  %1732 = vperm.xlu1 %2344, %v2216_v51  }
 0x111   : > { %v762_v11 = vunpack.c.l.b16 %v674_v58  ;;  %v609_v32 = vpack.c.bf16 %v598_v59, %v598_v59  ;;  %v741_v56 = vpack.c.b16 %v735_v52, %v734_v24  ;;  %v2048_v58 = vld [vmem:[#allocation5 + $0x8] sm:$0xf0]  ;;  %vm884_vm9 = vcmp.gt.s32.totalorder %v882_v22, %v883_v63 }
 0x112   : > { %828 = vmatmul.bf16.vlgmr.msrb.gmra.mxu0 %v2047_v55  ;;  %v733_v55 = vunpack.c.l.b16 %v604_v20  ;;  %v2051_v39 = vor.u32 %v2255_v57, %v2048_v58 }
 0x113   : > { %v738_v41 = vunpack.c.l.b16 %v609_v32 }
 0x114   : > { %v740_v59 = vpack.c.b16 %v733_v55, %v732_v54 }
 0x116   : > { %v665_v60 = vpop.f32.mrf.mxu3 }
 0x117   : > { %v675_v62 = vpack.c.bf16 %v665_v60, %v665_v60  ;;  %v2056_v60 = vld [vmem:[#allocation5 + $0x18] sm:$0xf0] }
 0x118   : > { %v600_v29 = vpop.f32.mrf.mxu2  ;;  %1804 = vperm.xlu1 %2344, %v2235_v10   ;;  %v2059_v61 = vor.u32 %v2257_v44, %v2056_v60 }
 0x119   : > { %v763_v12 = vunpack.c.l.b16 %v675_v62  ;;  %v610_v35 = vpack.c.bf16 %v600_v29, %v600_v29  ;;  %v962_v62 = vadd.s32 1, %v2659_v6  ;;  %v3011_v29 = vadd.s32 64, %v2644_v1 }
 0x11b   : > { %v767_v15 = vpack.c.b16 %v763_v12, %v762_v11  ;;  %v739_v43 = vunpack.c.l.b16 %v610_v35  ;;  %v966_v0 = vsub.s32 127, %v962_v62  ;;  %v2966_v12 = vadd.s32 112, %v2644_v1 }
 0x11d   : > { %839 = vmatpush.bf16.msrb.mxu1 %v767_v15  ;;  %v743_v50 = vpack.c.b16 %v739_v43, %v738_v41  ;;  %v967_v11 = vsub.s32 0, %v966_v0 }
 0x11f   : > { %vm968_vm15 = vcmp.gt.s32.totalorder %v966_v0, %v967_v11 }
 0x120   : > { %v969_v14 = vsel %vm968_vm15, %v966_v0, %v967_v11 }
 0x121   : > { %840 = vmatpush.bf16.msrb.mxu1 %v766_v23  ;;  %v2971_v15 = vsub.s32 127, %v969_v14  ;;  %v885_v23 = vsel %vm884_vm9, %v882_v22, %v883_v63  ;;  %v1065_v63 = vld [vmem:[%s3354_s5 + $0x18] sm:$0xff] }
 0x122   : > { %833 = vmatmul.bf16.gmra.mxu0 %v2055_v25  ;;  %v2991_v25 = vadd.s32 80, %v2644_v1  ;;  %v886_v28 = vsub.s32 127, %v885_v23  ;;  %1083 = vperm.xlu2 %2345, %v1065_v63  }
 0x123   : > { %vm985_vm2 = vcmp.eq.s32.totalorder %v2966_v12, %v2971_v15  ;;  %vm986_vm3 = vcmp.eq.s32.totalorder %v2969_v13, %v2971_v15  ;;  %vm983_vm5 = vcmp.eq.s32.totalorder %v2975_v17, %v2971_v15  ;;  %vm984_vm6 = vcmp.eq.s32.totalorder %v2978_v18, %v2971_v15 }
 0x124   : > { %vm2076_vm4 = vmpackc.low %vm986_vm3, %vm985_vm2  ;;  %vm981_vm10 = vcmp.eq.s32.totalorder %v2991_v25, %v2971_v15  ;;  %vm982_vm11 = vcmp.eq.s32.totalorder %v2994_v27, %v2971_v15  ;;  %vm901_vm13 = vcmp.eq.s32.totalorder %v2966_v12, %v886_v28  ;;  %vm902_vm14 = vcmp.eq.s32.totalorder %v2969_v13, %v886_v28 }
 0x125   : > { %841 = vmatpush.bf16.msrb.mxu1 %v765_v36  ;;  %2077 = vmatpush.bf16.msk.msra.mxu3 %vm2076_vm4, %v2481_v26  ;;  %vm2078_vm8 = vmpackc.low %vm984_vm6, %vm983_vm5  ;;  %vm899_vm0 = vcmp.eq.s32.totalorder %v2975_v17, %v886_v28  ;;  %vm900_vm1 = vcmp.eq.s32.totalorder %v2978_v18, %v886_v28  ;;  %vm897_vm3 = vcmp.eq.s32.totalorder %v2991_v25, %v886_v28 }
 0x126   : > { %vm2080_vm12 = vmpackc.low %vm982_vm11, %vm981_vm10  ;;  %vm898_vm4 = vcmp.eq.s32.totalorder %v2994_v27, %v886_v28  ;;  %vm895_vm6 = vcmp.eq.s32.totalorder %v3011_v29, %v886_v28  ;;  %vm896_vm7 = vcmp.eq.s32.totalorder %v3014_v30, %v886_v28  ;;  %vm980_vm9 = vcmp.eq.s32.totalorder %v3014_v30, %v2971_v15 }
 0x127   : > { %vm2060_vm15 = vmpackc.low %vm902_vm14, %vm901_vm13  ;;  %vm894_vm13 = vcmp.eq.s32.totalorder %v2651_v3, %v886_v28  ;;  %vm977_vm14 = vcmp.eq.s32.totalorder %v2648_v2, %v2971_v15 }
 0x128   : > { %2061 = vmatpush.bf16.msk.msra.mxu2 %vm2060_vm15, %v2481_v26  ;;  %vm2062_vm2 = vmpackc.low %vm900_vm1, %vm899_vm0  ;;  %vm978_vm0 = vcmp.eq.s32.totalorder %v2651_v3, %v2971_v15 }
 0x129   : > { %842 = vmatpush.bf16.msrb.mxu1 %v764_v37  ;;  %2079 = vmatpush.bf16.msk.msra.mxu3 %vm2078_vm8, %v2481_v26  ;;  %vm2064_vm5 = vmpackc.low %vm898_vm4, %vm897_vm3  ;;  %vm979_vm8 = vcmp.eq.s32.totalorder %v3011_v29, %v2971_v15  ;;  %vm892_vm3 = vcmp.eq.s32.totalorder %v2657_v5, %v886_v28  ;;  %vm975_vm4 = vcmp.eq.s32.totalorder %v2654_v4, %v2971_v15  ;;  %v788_v37 = vpop.permute.xlu0 %787 }
 0x12a   : > { %vm2066_vm10 = vmpackc.low %vm896_vm7, %vm895_vm6 }
 0x12b   : > { %vm2082_vm11 = vmpackc.low %vm980_vm9, %vm979_vm8  ;;  %vm889_vm8 = vcmp.eq.s32.totalorder %v2662_v7, %v886_v28  ;;  %vm890_vm9 = vcmp.eq.s32.totalorder %v2665_v8, %v886_v28 }
 0x12c   : > { %2063 = vmatpush.bf16.msk.msra.mxu2 %vm2062_vm2, %v2481_v26  ;;  %vm2084_vm15 = vmpackc.low %vm978_vm0, %vm977_vm14  ;;  %vm891_vm2 = vcmp.eq.s32.totalorder %v2654_v4, %v886_v28  ;;  %vm887_vm14 = vcmp.eq.s32.totalorder %v2644_v1, %v886_v28  ;;  %vm888_vm0 = vcmp.eq.s32.totalorder %v2668_v9, %v886_v28 }
 0x12d   : > { %843 = vmatpush.bf16.msrb.mxu1 %v743_v50  ;;  %2081 = vmatpush.bf16.msk.msra.mxu3 %vm2080_vm12, %v2481_v26  ;;  %vm893_vm12 = vcmp.eq.s32.totalorder %v2648_v2, %v886_v28  ;;  %vm2070_vm6 = vmpackc.low %vm892_vm3, %vm891_vm2  ;;  %v1128_v28 = vld [vmem:[%s3356_s7] sm:$0xff] }
 0x12e   : > { %vm2068_vm1 = vmpackc.low %vm894_vm13, %vm893_vm12  ;;  %1134 = vperm.xlu2 %2345, %v1128_v28  }
 0x12f   : > { %vm2072_vm12 = vmpackc.low %vm890_vm9, %vm889_vm8 }
 0x130   : > { %2065 = vmatpush.bf16.msk.msra.mxu2 %vm2064_vm5, %v2481_v26  ;;  %vm976_vm5 = vcmp.eq.s32.totalorder %v2657_v5, %v2971_v15  ;;  %vm2074_vm2 = vmpackc.low %vm888_vm0, %vm887_vm14 }
 0x131   : > { %844 = vmatpush.bf16.msrb.mxu1 %v742_v53  ;;  %2083 = vmatpush.bf16.msk.msra.mxu3 %vm2082_vm11, %v2481_v26  ;;  %vm2086_vm7 = vmpackc.low %vm976_vm5, %vm975_vm4  ;;  %vm974_vm11 = vcmp.eq.s32.totalorder %v2665_v8, %v2971_v15  ;;  %vm1096_vm4 = vcmask 785408  }
 0x134   : > { %2067 = vmatpush.bf16.msk.msra.mxu2 %vm2066_vm10, %v2481_v26  ;;  %vm973_vm10 = vcmp.eq.s32.totalorder %v2662_v7, %v2971_v15 }
 0x135   : > { %845 = vmatpush.bf16.msrb.mxu1 %v741_v56  ;;  %2085 = vmatpush.bf16.msk.msra.mxu3 %vm2084_vm15, %v2481_v26  ;;  %vm2088_vm13 = vmpackc.low %vm974_vm11, %vm973_vm10  ;;  %vm972_vm15 = vcmp.eq.s32.totalorder %v2668_v9, %v2971_v15  ;;  %v798_v56 = vpop.permute.xlu1 %797 }
 0x138   : > { %2069 = vmatpush.bf16.msk.msra.mxu2 %vm2068_vm1, %v2481_v26  ;;  %vm971_vm1 = vcmp.eq.s32.totalorder %v2644_v1, %v2971_v15 }
 0x139   : > { %846 = vmatpush.bf16.msrb.mxu1 %v740_v59  ;;  %2087 = vmatpush.bf16.msk.msra.mxu3 %vm2086_vm7, %v2481_v26  ;;  %vm2090_vm3 = vmpackc.low %vm972_vm15, %vm971_vm1 }
 0x13c   : > { %847 = vmatmul.bf16.vlgmr.msrb.gmra.mxu1 %v2051_v39  ;;  %2071 = vmatpush.bf16.msk.msra.mxu2 %vm2070_vm6, %v2481_v26 }
 0x13d   : > { %2089 = vmatpush.bf16.msk.msra.mxu3 %vm2088_vm13, %v2481_v26  ;;  %vm1162_vm13 = vcmask 261120  }
 0x140   : > { %2073 = vmatpush.bf16.msk.msra.mxu2 %vm2072_vm12, %v2481_v26 }
 0x141   : > { %2091 = vmatpush.bf16.msk.msra.mxu3 %vm2090_vm3, %v2481_v26 }
 0x144   : > { %2075 = vmatpush.bf16.msk.msra.mxu2 %vm2074_vm2, %v2481_v26 }
 0x14c   : > { %852 = vmatmul.bf16.gmra.mxu1 %v2059_v61 }
 0x18f   : > { %v829_v31 = vpop.f32.mrf.mxu0 }
 0x190   : > { %v830_v32 = vadd.f32 %v829_v31, %v783_v47 }
 0x197   : > { %v831_v35 = vpop.f32.mrf.mxu0 }
 0x198   : > { %v832_v34 = vadd.f32 %v831_v35, %v788_v37 }
 0x19f   : > { %v834_v45 = vpop.f32.mrf.mxu0 }
 0x1a0   : > { %v835_v50 = vadd.f32 %v834_v45, %v793_v48 }
 0x1a7   : > { %v836_v54 = vpop.f32.mrf.mxu0 }
 0x1a8   : > { %v837_v57 = vadd.f32 %v836_v54, %v798_v56  ;;  %v2167_v56 = vld [vmem:[%s3356_s7 + $0x28] sm:$0xff] }
 0x1b9   : > { %v848_v36 = vpop.f32.mrf.mxu1 }
 0x1ba   : > { %v849_v42 = vadd.f32 %v848_v36, %v830_v32 }
 0x1bc   : > { %v858_v38 = vmul.f32 0.01, %v849_v42 }
 0x1be   : > { %v862_v41 = vmax.f32 %v849_v42, %v858_v38 }
 0x1c0   : > { %v3056_v49 = vpack.c.bf16 %v862_v41, %v862_v41  ;;  %v1131_v41 = vld [vmem:[%s3356_s7 + $0x18] sm:$0xff] }
 0x1c1   : > { %v850_v40 = vpop.f32.mrf.mxu1  ;;  %1149 = vperm.xlu2 %2345, %v1131_v41  }
 0x1c2   : > { %v851_v43 = vadd.f32 %v850_v40, %v832_v34  ;;  %v931_v24 = vunpack.c.l.b16 %v3056_v49 }
 0x1c4   : > { %v859_v46 = vmul.f32 0.01, %v851_v43 }
 0x1c6   : > { %v863_v51 = vmax.f32 %v851_v43, %v859_v46 }
 0x1c8   : > { %v3058_v33 = vpack.c.bf16 %v863_v51, %v863_v51 }
 0x1c9   : > { %v853_v20 = vpop.f32.mrf.mxu1 }
 0x1ca   : > { %v932_v52 = vunpack.c.l.b16 %v3058_v33  ;;  %v854_v53 = vadd.f32 %v853_v20, %v835_v50  ;;  %v2148_v50 = vld [vmem:[%s3354_s5 + $0x20] sm:$0xff] }
 0x1cb   : > { %1400 = vperm.xlu2 %2345, %v2148_v50  }
 0x1cc   : > { %v935_v10 = vpack.c.b16 %v932_v52, %v931_v24  ;;  %v860_v55 = vmul.f32 0.01, %v854_v53 }
 0x1ce   : > { %947 = vmatmul.bf16.vlgmr.msra.gmra.mxu2 %v935_v10  ;;  %1019 = vmatmul.bf16.vlgmr.msra.gmra.mxu3 %v935_v10  ;;  %v864_v59 = vmax.f32 %v854_v53, %v860_v55 }
 0x1d0   : > { %v3062_v60 = vpack.c.bf16 %v864_v59, %v864_v59  ;;  %v2259_v59 = vld [vmem:[%s3353_s4] sm:$0xff] }
 0x1d1   : > { %v855_v58 = vpop.f32.mrf.mxu1 }
 0x1d2   : > { %v856_v39 = vadd.f32 %v855_v58, %v837_v57  ;;  %v933_v0 = vunpack.c.l.b16 %v3062_v60 }
 0x1d3   : > { %1472 = vperm.xlu2 %2345, %v2167_v56  }
 0x1d4   : > { %v861_v44 = vmul.f32 0.01, %v856_v39 }
 0x1d6   : > { %v865_v61 = vmax.f32 %v856_v39, %v861_v44  ;;  %v2217_v39 = vld [vmem:[%s3354_s5 + $0x48] sm:$0xff] }
 0x1d7   : > { %v2260_v44 = vld [vmem:[%s3353_s4 + $0x8] sm:$0xff] }
 0x1d8   : > { %v3064_v62 = vpack.c.bf16 %v865_v61, %v865_v61  ;;  %v2236_v61 = vld [vmem:[%s3356_s7 + $0x50] sm:$0xff] }
 0x1da   : > { %v934_v11 = vunpack.c.l.b16 %v3064_v62 }
 0x1dc   : > { %v936_v14 = vpack.c.b16 %v934_v11, %v933_v0 }
 0x1de   : > { %952 = vmatmul.bf16.gmra.mxu2 %v936_v14  ;;  %1024 = vmatmul.bf16.gmra.mxu3 %v936_v14 }
 0x251   : > { %v1020_v15 = vpop.f32.mrf.mxu3  ;;  %v948_v16 = vpop.f32.mrf.mxu2 }
 0x252   : > { %v1030_v42 = vpack.c.bf16 %v1020_v15, %v1020_v15  ;;  %v958_v52 = vpack.c.bf16 %v948_v16, %v948_v16  ;;  %v1208_v16 = vadd.s32 4294967293, %v2659_v6 }
 0x254   : > { %v1050_v43 = vunpack.c.l.b16 %v1030_v42  ;;  %v1038_v57 = vunpack.c.l.b16 %v958_v52 }
 0x259   : > { %v1022_v21 = vpop.f32.mrf.mxu3  ;;  %v950_v22 = vpop.f32.mrf.mxu2 }
 0x25a   : > { %v1031_v35 = vpack.c.bf16 %v1022_v21, %v1022_v21  ;;  %v959_v20 = vpack.c.bf16 %v950_v22, %v950_v22  ;;  %v1209_v21 = vsub.s32 0, %v1208_v16  ;;  %v1296_v22 = vsub.s32 127, %v1292_v19 }
 0x25c   : > { %v1051_v34 = vunpack.c.l.b16 %v1031_v35  ;;  %v1039_v54 = vunpack.c.l.b16 %v959_v20  ;;  %vm1210_vm5 = vcmp.gt.s32.totalorder %v1208_v16, %v1209_v21  ;;  %v1297_v28 = vsub.s32 0, %v1296_v22  ;;  %v1074_v35 = vpop.permute.xlu1 %1073 }
 0x25e   : > { %v1054_v45 = vpack.c.b16 %v1051_v34, %v1050_v43  ;;  %v1042_v58 = vpack.c.b16 %v1039_v54, %v1038_v57  ;;  %vm1298_vm6 = vcmp.gt.s32.totalorder %v1296_v22, %v1297_v28  ;;  %v1069_v34 = vpop.permute.xlu0 %1068  ;;  %v1196_v57 = vunpack.c.l.bf16 %v3056_v49 }
 0x261   : > { %v1025_v23 = vpop.f32.mrf.mxu3  ;;  %v953_v47 = vpop.f32.mrf.mxu2 }
 0x262   : > { %v1032_v31 = vpack.c.bf16 %v1025_v23, %v1025_v23  ;;  %v960_v51 = vpack.c.bf16 %v953_v47, %v953_v47 }
 0x264   : > { %v1052_v38 = vunpack.c.l.b16 %v1032_v31  ;;  %v1040_v53 = vunpack.c.l.b16 %v960_v51  ;;  %v2262_v51 = vld [vmem:[%s3355_s6 + $0x8] sm:$0xff] }
 0x269   : > { %v1027_v32 = vpop.f32.mrf.mxu3  ;;  %v955_v46 = vpop.f32.mrf.mxu2 }
 0x26a   : > { %v1033_v36 = vpack.c.bf16 %v1027_v32, %v1027_v32  ;;  %v961_v48 = vpack.c.bf16 %v955_v46, %v955_v46  ;;  %v1211_v32 = vsel %vm1210_vm5, %v1208_v16, %v1209_v21 }
 0x26c   : > { %v1053_v37 = vunpack.c.l.b16 %v1033_v36  ;;  %v1041_v24 = vunpack.c.l.b16 %v961_v48  ;;  %v1212_v36 = vsub.s32 127, %v1211_v32  ;;  %v2261_v48 = vld [vmem:[%s3355_s6] sm:$0xff] }
 0x26e   : > { %v1055_v40 = vpack.c.b16 %v1053_v37, %v1052_v38  ;;  %v1043_v55 = vpack.c.b16 %v1041_v24, %v1040_v53  ;;  %v1299_v37 = vsel %vm1298_vm6, %v1296_v22, %v1297_v28  ;;  %v1198_v28 = vunpack.c.l.bf16 %v3062_v60 }
 0x26f   : > { %v3105_v41 = vsub.s32 127, %v1299_v37 }
 0x270   : > { %1105 = vmatpush.bf16.msra.mxu0 %v1055_v40  ;;  %v1213_v40 = vsub.s32 0, %v1212_v36 }
 0x271   : > { %vm1315_vm8 = vcmp.eq.s32.totalorder %v2966_v12, %v3105_v41  ;;  %vm1316_vm9 = vcmp.eq.s32.totalorder %v2969_v13, %v3105_v41  ;;  %vm1313_vm11 = vcmp.eq.s32.totalorder %v2975_v17, %v3105_v41  ;;  %vm1314_vm12 = vcmp.eq.s32.totalorder %v2978_v18, %v3105_v41 }
 0x272   : > { %vm1214_vm7 = vcmp.gt.s32.totalorder %v1212_v36, %v1213_v40  ;;  %vm2128_vm10 = vmpackc.low %vm1316_vm9, %vm1315_vm8  ;;  %vm1311_vm8 = vcmp.eq.s32.totalorder %v2991_v25, %v3105_v41  ;;  %vm1312_vm9 = vcmp.eq.s32.totalorder %v2994_v27, %v3105_v41 }
 0x273   : > { %v1215_v46 = vsel %vm1214_vm7, %v1212_v36, %v1213_v40  ;;  %2129 = vmatpush.bf16.msk.msrb.mxu3 %vm2128_vm10, %v2481_v26  ;;  %vm2130_vm2 = vmpackc.low %vm1314_vm12, %vm1313_vm11 }
 0x274   : > { %1106 = vmatpush.bf16.msra.mxu0 %v1054_v45  ;;  %v1216_v50 = vsub.s32 127, %v1215_v46  ;;  %vm2132_vm11 = vmpackc.low %vm1312_vm9, %vm1311_vm8 }
 0x276   : > { %vm1231_vm14 = vcmp.eq.s32.totalorder %v2966_v12, %v1216_v50  ;;  %vm1232_vm0 = vcmp.eq.s32.totalorder %v2969_v13, %v1216_v50  ;;  %vm1229_vm1 = vcmp.eq.s32.totalorder %v2975_v17, %v1216_v50  ;;  %vm1230_vm15 = vcmp.eq.s32.totalorder %v2978_v18, %v1216_v50 }
 0x277   : > { %vm2112_vm3 = vmpackc.low %vm1232_vm0, %vm1231_vm14  ;;  %2131 = vmatpush.bf16.msk.msrb.mxu3 %vm2130_vm2, %v2481_v26  ;;  %vm1227_vm6 = vcmp.eq.s32.totalorder %v2991_v25, %v1216_v50  ;;  %vm1228_vm7 = vcmp.eq.s32.totalorder %v2994_v27, %v1216_v50  ;;  %vm1225_vm12 = vcmp.eq.s32.totalorder %v3011_v29, %v1216_v50  ;;  %vm1226_vm14 = vcmp.eq.s32.totalorder %v3014_v30, %v1216_v50 }
 0x278   : > { %1107 = vmatpush.bf16.msra.mxu0 %v936_v14  ;;  %v1079_v14 = vpop.permute.xlu2 %1078  ;;  %2113 = vmatpush.bf16.msk.msrb.mxu2 %vm2112_vm3, %v2481_v26  ;;  %vm2114_vm5 = vmpackc.low %vm1230_vm15, %vm1229_vm1  ;;  %vm1309_vm0 = vcmp.eq.s32.totalorder %v3011_v29, %v3105_v41  ;;  %vm1310_vm1 = vcmp.eq.s32.totalorder %v3014_v30, %v3105_v41  ;;  %vm1223_vm3 = vcmp.eq.s32.totalorder %v2648_v2, %v1216_v50 }
 0x279   : > { %vm2116_vm10 = vmpackc.low %vm1228_vm7, %vm1227_vm6  ;;  %vm1307_vm6 = vcmp.eq.s32.totalorder %v2648_v2, %v3105_v41  ;;  %vm1308_vm7 = vcmp.eq.s32.totalorder %v2651_v3, %v3105_v41 }
 0x27a   : > { %vm2118_vm15 = vmpackc.low %vm1226_vm14, %vm1225_vm12  ;;  %vm1305_vm12 = vcmp.eq.s32.totalorder %v2654_v4, %v3105_v41  ;;  %vm1306_vm14 = vcmp.eq.s32.totalorder %v2657_v5, %v3105_v41 }
 0x27b   : > { %2133 = vmatpush.bf16.msk.msrb.mxu3 %vm2132_vm11, %v2481_v26  ;;  %vm2134_vm2 = vmpackc.low %vm1310_vm1, %vm1309_vm0  ;;  %vm1222_vm11 = vcmp.eq.s32.totalorder %v2657_v5, %v1216_v50 }
 0x27c   : > { %1108 = vmatpush.bf16.msra.mxu0 %v935_v10  ;;  %v2218_v10 = vld [vmem:[%s3354_s5 + $0x50] sm:$0xff]  ;;  %2115 = vmatpush.bf16.msk.msrb.mxu2 %vm2114_vm5, %v2481_v26  ;;  %vm1224_vm5 = vcmp.eq.s32.totalorder %v2651_v3, %v1216_v50  ;;  %vm2136_vm9 = vmpackc.low %vm1308_vm7, %vm1307_vm6 }
 0x27d   : > { %1742 = vperm.xlu2 %2345, %v2218_v10   ;;  %vm2120_vm8 = vmpackc.low %vm1224_vm5, %vm1223_vm3  ;;  %vm1303_vm3 = vcmp.eq.s32.totalorder %v2662_v7, %v3105_v41  ;;  %vm1304_vm5 = vcmp.eq.s32.totalorder %v2665_v8, %v3105_v41 }
 0x27e   : > { %vm2138_vm1 = vmpackc.low %vm1306_vm14, %vm1305_vm12 }
 0x27f   : > { %2135 = vmatpush.bf16.msk.msrb.mxu3 %vm2134_vm2, %v2481_v26  ;;  %vm1220_vm2 = vcmp.eq.s32.totalorder %v2665_v8, %v1216_v50  ;;  %vm2140_vm7 = vmpackc.low %vm1304_vm5, %vm1303_vm3 }
 0x280   : > { %1109 = vmatpush.bf16.msra.mxu0 %v1043_v55  ;;  %v1084_v63 = vpop.permute.xlu2 %1083  ;;  %2117 = vmatpush.bf16.msk.msrb.mxu2 %vm2116_vm10, %v2481_v26  ;;  %vm1221_vm10 = vcmp.eq.s32.totalorder %v2654_v4, %v1216_v50  ;;  %v1140_v55 = vpop.permute.xlu0 %1139 }
 0x281   : > { %vm2122_vm0 = vmpackc.low %vm1222_vm11, %vm1221_vm10  ;;  %vm1301_vm10 = vcmp.eq.s32.totalorder %v2644_v1, %v3105_v41  ;;  %vm1302_vm11 = vcmp.eq.s32.totalorder %v2668_v9, %v3105_v41 }
 0x282   : > { %vm2142_vm14 = vmpackc.low %vm1302_vm11, %vm1301_vm10 }
 0x283   : > { %2137 = vmatpush.bf16.msk.msrb.mxu3 %vm2136_vm9, %v2481_v26  ;;  %vm1218_vm9 = vcmp.eq.s32.totalorder %v2668_v9, %v1216_v50 }
 0x284   : > { %1110 = vmatpush.bf16.msra.mxu0 %v1042_v58  ;;  %2119 = vmatpush.bf16.msk.msrb.mxu2 %vm2118_vm15, %v2481_v26  ;;  %vm1219_vm15 = vcmp.eq.s32.totalorder %v2662_v7, %v1216_v50 }
 0x285   : > { %1737 = vperm.xlu2 %2345, %v2217_v39   ;;  %vm2124_vm6 = vmpackc.low %vm1220_vm2, %vm1219_vm15  ;;  %v1197_v39 = vunpack.c.l.bf16 %v3058_v33 }
 0x287   : > { %2100 = vmatmul.msk.bf16.vlgmr.msra.gmra.mxu0 %vm1096_vm4, %v2259_v59  ;;  %2139 = vmatpush.bf16.msk.msrb.mxu3 %vm2138_vm1, %v2481_v26 }
 0x288   : > { %2121 = vmatpush.bf16.msk.msrb.mxu2 %vm2120_vm8, %v2481_v26  ;;  %vm1217_vm8 = vcmp.eq.s32.totalorder %v2644_v1, %v1216_v50  ;;  %v1135_v20 = vpop.permute.xlu2 %1134 }
 0x289   : > { %vm2126_vm12 = vmpackc.low %vm1218_vm9, %vm1217_vm8 }
 0x28b   : > { %2141 = vmatpush.bf16.msk.msrb.mxu3 %vm2140_vm7, %v2481_v26 }
 0x28c   : > { %2123 = vmatpush.bf16.msk.msrb.mxu2 %vm2122_vm0, %v2481_v26 }
 0x28d   : > { %1809 = vperm.xlu2 %2345, %v2236_v61  }
 0x28f   : > { %2143 = vmatpush.bf16.msk.msrb.mxu3 %vm2142_vm14, %v2481_v26 }
 0x290   : > { %2125 = vmatpush.bf16.msk.msrb.mxu2 %vm2124_vm6, %v2481_v26 }
 0x294   : > { %2127 = vmatpush.bf16.msk.msrb.mxu2 %vm2126_vm12, %v2481_v26 }
 0x297   : > { %2101 = vmatmul.msk.bf16.gmra.mxu0 %vm1096_vm4, %v2260_v44 }
 0x304   : > { %v1112_v0 = vpop.f32.mrf.mxu0 }
 0x305   : > { %v1113_v43 = vadd.f32 %v1112_v0, %v1069_v34 }
 0x30c   : > { %v1114_v11 = vpop.f32.mrf.mxu0 }
 0x30d   : > { %v1115_v42 = vadd.f32 %v1114_v11, %v1074_v35  ;;  %v1145_v11 = vpop.permute.xlu1 %1144  ;;  %v1199_v35 = vunpack.c.l.bf16 %v3064_v62 }
 0x30f   : > { %v1126_v45 = vpack.c.bf16 %v1115_v42, %v1113_v43 }
 0x314   : > { %v1117_v15 = vpop.f32.mrf.mxu0 }
 0x315   : > { %v1118_v31 = vadd.f32 %v1117_v15, %v1079_v14 }
 0x31c   : > { %v1119_v23 = vpop.f32.mrf.mxu0 }
 0x31d   : > { %v1120_v47 = vadd.f32 %v1119_v23, %v1084_v63  ;;  %v1150_v23 = vpop.permute.xlu2 %1149 }
 0x31f   : > { %v1127_v38 = vpack.c.bf16 %v1120_v47, %v1118_v31 }
 0x321   : > { %1175 = vmatpush.bf16.msra.mxu1 %v1127_v38 }
 0x325   : > { %1176 = vmatpush.bf16.msra.mxu1 %v1126_v45 }
 0x328   : > { %2110 = vmatmul.msk.bf16.vlgmr.msra.gmra.mxu1 %vm1162_vm13, %v2261_v48 }
 0x338   : > { %2111 = vmatmul.msk.bf16.gmra.mxu1 %vm1162_vm13, %v2262_v51 }
 0x3a5   : > { %v1178_v24 = vpop.f32.mrf.mxu1 }
 0x3a6   : > { %v1179_v52 = vadd.f32 %v1178_v24, %v1135_v20 }
 0x3a8   : > { %v1188_v53 = vmul.f32 0.01, %v1179_v52 }
 0x3aa   : > { %v1192_v54 = vmax.f32 %v1179_v52, %v1188_v53 }
 0x3ac   : > { %v1200_v59 = vadd.f32 %v1196_v57, %v1192_v54 }
 0x3ad   : > { %v1180_v56 = vpop.f32.mrf.mxu1 }
 0x3ae   : > { %v1181_v58 = vadd.f32 %v1180_v56, %v1140_v55  ;;  %v3181_v61 = vpack.c.bf16 %v1200_v59, %v1200_v59 }
 0x3b0   : > { %v1189_v10 = vmul.f32 0.01, %v1181_v58  ;;  %v1261_v19 = vunpack.c.l.b16 %v3181_v61 }
 0x3b2   : > { %v1193_v44 = vmax.f32 %v1181_v58, %v1189_v10 }
 0x3b4   : > { %v1201_v0 = vadd.f32 %v1197_v39, %v1193_v44 }
 0x3b5   : > { %v1183_v14 = vpop.f32.mrf.mxu1 }
 0x3b6   : > { %v3183_v15 = vpack.c.bf16 %v1201_v0, %v1201_v0  ;;  %v1184_v16 = vadd.f32 %v1183_v14, %v1145_v11 }
 0x3b8   : > { %v1262_v21 = vunpack.c.l.b16 %v3183_v15  ;;  %v1190_v22 = vmul.f32 0.01, %v1184_v16 }
 0x3ba   : > { %v1265_v49 = vpack.c.b16 %v1262_v21, %v1261_v19  ;;  %v1194_v63 = vmax.f32 %v1184_v16, %v1190_v22 }
 0x3bc   : > { %1277 = vmatmul.bf16.vlgmr.msrb.gmra.mxu2 %v1265_v49  ;;  %1349 = vmatmul.bf16.vlgmr.msrb.gmra.mxu3 %v1265_v49  ;;  %v1202_v47 = vadd.f32 %v1198_v28, %v1194_v63  ;;  %v2263_v63 = vld [vmem:[%s3353_s4 + $0x10] sm:$0xff]  ;;  %v1411_v28 = vpop.permute.xlu0 %1410 }
 0x3bd   : > { %v1185_v33 = vpop.f32.mrf.mxu1 }
 0x3be   : > { %v1186_v31 = vadd.f32 %v1185_v33, %v1150_v23  ;;  %v3189_v42 = vpack.c.bf16 %v1202_v47, %v1202_v47  ;;  %v2264_v23 = vld [vmem:[%s3353_s4 + $0x18] sm:$0xff]  ;;  %v1540_v47 = vadd.s32 4294967287, %v2659_v6 }
 0x3c0   : > { %v1191_v32 = vmul.f32 0.01, %v1186_v31  ;;  %v1263_v34 = vunpack.c.l.b16 %v3189_v42 }
 0x3c2   : > { %v1195_v36 = vmax.f32 %v1186_v31, %v1191_v32  ;;  %v1624_v32 = vadd.s32 9, %v2659_v6 }
 0x3c4   : > { %v1203_v38 = vadd.f32 %v1199_v35, %v1195_v36  ;;  %v1541_v35 = vsub.s32 0, %v1540_v47  ;;  %v1628_v36 = vsub.s32 127, %v1624_v32 }
 0x3c6   : > { %v3191_v37 = vpack.c.bf16 %v1203_v38, %v1203_v38  ;;  %v1416_v38 = vpop.permute.xlu1 %1415  ;;  %vm1542_vm0 = vcmp.gt.s32.totalorder %v1540_v47, %v1541_v35 }
 0x3c8   : > { %v1264_v40 = vunpack.c.l.b16 %v3191_v37 }
 0x3ca   : > { %v1266_v41 = vpack.c.b16 %v1264_v40, %v1263_v34  ;;  %v1629_v40 = vsub.s32 0, %v1628_v36 }
 0x3cc   : > { %1282 = vmatmul.bf16.gmra.mxu2 %v1266_v41  ;;  %1354 = vmatmul.bf16.gmra.mxu3 %v1266_v41  ;;  %vm1630_vm1 = vcmp.gt.s32.totalorder %v1628_v36, %v1629_v40 }
 0x43f   : > { %v1350_v43 = vpop.f32.mrf.mxu3  ;;  %v1278_v60 = vpop.f32.mrf.mxu2 }
 0x440   : > { %v1360_v52 = vpack.c.bf16 %v1350_v43, %v1350_v43  ;;  %v1288_v11 = vpack.c.bf16 %v1278_v60, %v1278_v60  ;;  %v1543_v60 = vsel %vm1542_vm0, %v1540_v47, %v1541_v35 }
 0x442   : > { %v1380_v57 = vunpack.c.l.b16 %v1360_v52  ;;  %v1368_v21 = vunpack.c.l.b16 %v1288_v11 }
 0x447   : > { %v1352_v45 = vpop.f32.mrf.mxu3  ;;  %v1280_v46 = vpop.f32.mrf.mxu2 }
 0x448   : > { %v1361_v20 = vpack.c.bf16 %v1352_v45, %v1352_v45  ;;  %v1289_v44 = vpack.c.bf16 %v1280_v46, %v1280_v46  ;;  %v1406_v45 = vpop.permute.xlu0 %1405  ;;  %v1544_v46 = vsub.s32 127, %v1543_v60 }
 0x44a   : > { %v1381_v55 = vunpack.c.l.b16 %v1361_v20  ;;  %v1369_v16 = vunpack.c.l.b16 %v1289_v44  ;;  %v1545_v20 = vsub.s32 0, %v1544_v46 }
 0x44c   : > { %v1384_v58 = vpack.c.b16 %v1381_v55, %v1380_v57  ;;  %v1372_v22 = vpack.c.b16 %v1369_v16, %v1368_v21  ;;  %vm1546_vm15 = vcmp.gt.s32.totalorder %v1544_v46, %v1545_v20 }
 0x44f   : > { %v1355_v48 = vpop.f32.mrf.mxu3  ;;  %v1283_v62 = vpop.f32.mrf.mxu2 }
 0x450   : > { %v1362_v50 = vpack.c.bf16 %v1355_v48, %v1355_v48  ;;  %v1290_v39 = vpack.c.bf16 %v1283_v62, %v1283_v62  ;;  %v1631_v62 = vsel %vm1630_vm1, %v1628_v36, %v1629_v40 }
 0x452   : > { %v1382_v53 = vunpack.c.l.b16 %v1362_v50  ;;  %v1370_v14 = vunpack.c.l.b16 %v1290_v39 }
 0x457   : > { %v1357_v51 = vpop.f32.mrf.mxu3  ;;  %v1285_v59 = vpop.f32.mrf.mxu2 }
 0x458   : > { %v1363_v24 = vpack.c.bf16 %v1357_v51, %v1357_v51  ;;  %v1291_v10 = vpack.c.bf16 %v1285_v59, %v1285_v59  ;;  %v1401_v51 = vpop.permute.xlu2 %1400 }
 0x45a   : > { %v1383_v54 = vunpack.c.l.b16 %v1363_v24  ;;  %v1371_v0 = vunpack.c.l.b16 %v1291_v10  ;;  %v3205_v24 = vsub.s32 127, %v1631_v62 }
 0x45c   : > { %v1385_v56 = vpack.c.b16 %v1383_v54, %v1382_v53  ;;  %v1373_v19 = vpack.c.b16 %v1371_v0, %v1370_v14  ;;  %vm1647_vm2 = vcmp.eq.s32.totalorder %v2966_v12, %v3205_v24  ;;  %vm1648_vm3 = vcmp.eq.s32.totalorder %v2969_v13, %v3205_v24  ;;  %v2265_v54 = vld [vmem:[%s3355_s6 + $0x10] sm:$0xff] }
 0x45d   : > { %v1547_v53 = vsel %vm1546_vm15, %v1544_v46, %v1545_v20  ;;  %vm2196_vm5 = vmpackc.low %vm1648_vm3, %vm1647_vm2  ;;  %vm1645_vm6 = vcmp.eq.s32.totalorder %v2975_v17, %v3205_v24  ;;  %vm1646_vm7 = vcmp.eq.s32.totalorder %v2978_v18, %v3205_v24  ;;  %vm1643_vm2 = vcmp.eq.s32.totalorder %v2991_v25, %v3205_v24 }
 0x45e   : > { %1436 = vmatpush.bf16.msrb.mxu0 %v1385_v56  ;;  %v1548_v55 = vsub.s32 127, %v1547_v53  ;;  %2197 = vmatpush.bf16.msk.msra.mxu3 %vm2196_vm5, %v2481_v26  ;;  %vm2198_vm12 = vmpackc.low %vm1646_vm7, %vm1645_vm6  ;;  %vm1644_vm3 = vcmp.eq.s32.totalorder %v2994_v27, %v3205_v24  ;;  %v1478_v56 = vpop.permute.xlu0 %1477 }
 0x45f   : > { %vm2200_vm6 = vmpackc.low %vm1644_vm3, %vm1643_vm2 }
 0x460   : > { %vm1563_vm8 = vcmp.eq.s32.totalorder %v2966_v12, %v1548_v55  ;;  %vm1564_vm9 = vcmp.eq.s32.totalorder %v2969_v13, %v1548_v55  ;;  %vm1561_vm10 = vcmp.eq.s32.totalorder %v2975_v17, %v1548_v55  ;;  %vm1562_vm11 = vcmp.eq.s32.totalorder %v2978_v18, %v1548_v55  ;;  %v2266_v12 = vld [vmem:[%s3355_s6 + $0x18] sm:$0xff] }
 0x461   : > { %vm2180_vm14 = vmpackc.low %vm1564_vm9, %vm1563_vm8  ;;  %vm1559_vm1 = vcmp.eq.s32.totalorder %v2991_v25, %v1548_v55  ;;  %vm1560_vm15 = vcmp.eq.s32.totalorder %v2994_v27, %v1548_v55  ;;  %vm1557_vm7 = vcmp.eq.s32.totalorder %v3011_v29, %v1548_v55  ;;  %vm1558_vm8 = vcmp.eq.s32.totalorder %v3014_v30, %v1548_v55 }
 0x462   : > { %1437 = vmatpush.bf16.msrb.mxu0 %v1384_v58  ;;  %2181 = vmatpush.bf16.msk.msra.mxu2 %vm2180_vm14, %v2481_v26  ;;  %vm2182_vm0 = vmpackc.low %vm1562_vm11, %vm1561_vm10  ;;  %vm1641_vm9 = vcmp.eq.s32.totalorder %v3011_v29, %v3205_v24  ;;  %vm1642_vm10 = vcmp.eq.s32.totalorder %v3014_v30, %v3205_v24  ;;  %vm1555_vm14 = vcmp.eq.s32.totalorder %v2648_v2, %v1548_v55  ;;  %v1528_v17 = vunpack.c.l.bf16 %v3181_v61 }
 0x463   : > { %2199 = vmatpush.bf16.msk.msra.mxu3 %vm2198_vm12, %v2481_v26  ;;  %vm2184_vm5 = vmpackc.low %vm1560_vm15, %vm1559_vm1  ;;  %vm1639_vm1 = vcmp.eq.s32.totalorder %v2648_v2, %v3205_v24  ;;  %vm1640_vm15 = vcmp.eq.s32.totalorder %v2651_v3, %v3205_v24  ;;  %v1468_v2 = vpop.permute.xlu1 %1467 }
 0x464   : > { %vm2186_vm11 = vmpackc.low %vm1558_vm8, %vm1557_vm7  ;;  %vm1637_vm7 = vcmp.eq.s32.totalorder %v2654_v4, %v3205_v24  ;;  %vm1638_vm8 = vcmp.eq.s32.totalorder %v2657_v5, %v3205_v24 }
 0x465   : > { %vm2202_vm12 = vmpackc.low %vm1642_vm10, %vm1641_vm9 }
 0x466   : > { %1438 = vmatpush.bf16.msrb.mxu0 %v1266_v41  ;;  %2183 = vmatpush.bf16.msk.msra.mxu2 %vm2182_vm0, %v2481_v26  ;;  %vm1556_vm0 = vcmp.eq.s32.totalorder %v2651_v3, %v1548_v55  ;;  %vm2204_vm3 = vmpackc.low %vm1640_vm15, %vm1639_vm1 }
 0x467   : > { %2201 = vmatpush.bf16.msk.msra.mxu3 %vm2200_vm6, %v2481_v26  ;;  %vm2188_vm2 = vmpackc.low %vm1556_vm0, %vm1555_vm14  ;;  %vm1554_vm6 = vcmp.eq.s32.totalorder %v2657_v5, %v1548_v55  ;;  %vm1635_vm14 = vcmp.eq.s32.totalorder %v2662_v7, %v3205_v24  ;;  %vm1636_vm0 = vcmp.eq.s32.totalorder %v2665_v8, %v3205_v24 }
 0x468   : > { %vm2206_vm10 = vmpackc.low %vm1638_vm8, %vm1637_vm7 }
 0x469   : > { %vm2208_vm15 = vmpackc.low %vm1636_vm0, %vm1635_vm14 }
 0x46a   : > { %1439 = vmatpush.bf16.msrb.mxu0 %v1265_v49  ;;  %2185 = vmatpush.bf16.msk.msra.mxu2 %vm2184_vm5, %v2481_v26  ;;  %vm1553_vm5 = vcmp.eq.s32.totalorder %v2654_v4, %v1548_v55 }
 0x46b   : > { %2203 = vmatpush.bf16.msk.msra.mxu3 %vm2202_vm12, %v2481_v26  ;;  %vm2190_vm9 = vmpackc.low %vm1554_vm6, %vm1553_vm5  ;;  %vm1552_vm12 = vcmp.eq.s32.totalorder %v2665_v8, %v1548_v55  ;;  %vm1633_vm5 = vcmp.eq.s32.totalorder %v2644_v1, %v3205_v24  ;;  %vm1634_vm6 = vcmp.eq.s32.totalorder %v2668_v9, %v3205_v24  ;;  %v1473_v8 = vpop.permute.xlu2 %1472  ;;  %v1483_v0 = vpop.permute.xlu1 %1482 }
 0x46c   : > { %vm2210_vm8 = vmpackc.low %vm1634_vm6, %vm1633_vm5 }
 0x46e   : > { %1440 = vmatpush.bf16.msrb.mxu0 %v1373_v19  ;;  %2187 = vmatpush.bf16.msk.msra.mxu2 %vm2186_vm11, %v2481_v26  ;;  %vm1551_vm11 = vcmp.eq.s32.totalorder %v2662_v7, %v1548_v55 }
 0x46f   : > { %2205 = vmatpush.bf16.msk.msra.mxu3 %vm2204_vm3, %v2481_v26  ;;  %vm2192_vm1 = vmpackc.low %vm1552_vm12, %vm1551_vm11  ;;  %vm1550_vm3 = vcmp.eq.s32.totalorder %v2668_v9, %v1548_v55  ;;  %v1529_v9 = vunpack.c.l.bf16 %v3183_v15  ;;  %v1530_v15 = vunpack.c.l.bf16 %v3189_v42 }
 0x472   : > { %1441 = vmatpush.bf16.msrb.mxu0 %v1372_v22  ;;  %2189 = vmatpush.bf16.msk.msra.mxu2 %vm2188_vm2, %v2481_v26  ;;  %vm1549_vm2 = vcmp.eq.s32.totalorder %v2644_v1, %v1548_v55  ;;  %v1531_v22 = vunpack.c.l.bf16 %v3191_v37 }
 0x473   : > { %2207 = vmatpush.bf16.msk.msra.mxu3 %vm2206_vm10, %v2481_v26  ;;  %vm2194_vm7 = vmpackc.low %vm1550_vm3, %vm1549_vm2 }
 0x475   : > { %2160 = vmatmul.msk.bf16.vlgmr.msrb.gmra.mxu0 %vm1096_vm4, %v2263_v63 }
 0x476   : > { %2191 = vmatpush.bf16.msk.msra.mxu2 %vm2190_vm9, %v2481_v26 }
 0x477   : > { %2209 = vmatpush.bf16.msk.msra.mxu3 %vm2208_vm15, %v2481_v26 }
 0x47a   : > { %2193 = vmatpush.bf16.msk.msra.mxu2 %vm2192_vm1, %v2481_v26 }
 0x47b   : > { %2211 = vmatpush.bf16.msk.msra.mxu3 %vm2210_vm8, %v2481_v26 }
 0x47e   : > { %2195 = vmatpush.bf16.msk.msra.mxu2 %vm2194_vm7, %v2481_v26 }
 0x485   : > { %2161 = vmatmul.msk.bf16.gmra.mxu0 %vm1096_vm4, %v2264_v23 }
 0x4f2   : > { %v1443_v33 = vpop.f32.mrf.mxu0 }
 0x4f3   : > { %v1444_v6 = vadd.f32 %v1443_v33, %v1401_v51 }
 0x4fa   : > { %v1445_v49 = vpop.f32.mrf.mxu0 }
 0x4fb   : > { %v1446_v48 = vadd.f32 %v1445_v49, %v1406_v45 }
 0x4fd   : > { %v1458_v52 = vpack.c.bf16 %v1446_v48, %v1444_v6 }
 0x502   : > { %v1448_v31 = vpop.f32.mrf.mxu0 }
 0x503   : > { %v1449_v41 = vadd.f32 %v1448_v31, %v1411_v28 }
 0x50a   : > { %v1450_v34 = vpop.f32.mrf.mxu0 }
 0x50b   : > { %v1451_v43 = vadd.f32 %v1450_v34, %v1416_v38 }
 0x50d   : > { %v1459_v50 = vpack.c.bf16 %v1451_v43, %v1449_v41 }
 0x50f   : > { %1507 = vmatpush.bf16.msrb.mxu1 %v1459_v50 }
 0x513   : > { %1508 = vmatpush.bf16.msrb.mxu1 %v1458_v52 }
 0x516   : > { %2178 = vmatmul.msk.bf16.vlgmr.msrb.gmra.mxu1 %vm1162_vm13, %v2265_v54 }
 0x526   : > { %2179 = vmatmul.msk.bf16.gmra.mxu1 %vm1162_vm13, %v2266_v12 }
 0x593   : > { %v1510_v3 = vpop.f32.mrf.mxu1 }
 0x594   : > { %v1511_v4 = vadd.f32 %v1510_v3, %v1468_v2 }
 0x596   : > { %v1520_v5 = vmul.f32 0.01, %v1511_v4 }
 0x598   : > { %v1524_v7 = vmax.f32 %v1511_v4, %v1520_v5  ;;  %v2267_v4 = vld [vmem:[%s3353_s4 + $0x20] sm:$0xff]  ;;  %v2268_v5 = vld [vmem:[%s3353_s4 + $0x28] sm:$0xff] }
 0x59a   : > { %v1532_v1 = vadd.f32 %v1528_v17, %v1524_v7 }
 0x59b   : > { %v1512_v13 = vpop.f32.mrf.mxu1 }
 0x59c   : > { %v1513_v18 = vadd.f32 %v1512_v13, %v1473_v8  ;;  %v3281_v29 = vpack.c.bf16 %v1532_v1, %v1532_v1  ;;  %v1743_v13 = vpop.permute.xlu2 %1742 }
 0x59e   : > { %v1521_v25 = vmul.f32 0.01, %v1513_v18  ;;  %v1593_v59 = vunpack.c.l.b16 %v3281_v29 }
 0x5a0   : > { %v1525_v27 = vmax.f32 %v1513_v18, %v1521_v25  ;;  %v1748_v18 = vpop.permute.xlu0 %1747 }
 0x5a2   : > { %v1533_v30 = vadd.f32 %v1529_v9, %v1525_v27 }
 0x5a3   : > { %v1515_v26 = vpop.f32.mrf.mxu1 }
 0x5a4   : > { %v3283_v57 = vpack.c.bf16 %v1533_v30, %v1533_v30  ;;  %v1516_v58 = vadd.f32 %v1515_v26, %v1478_v56  ;;  %v1738_v9 = vpop.permute.xlu2 %1737  ;;  %v1733_v26 = vpop.permute.xlu1 %1732 }
 0x5a6   : > { %v1594_v10 = vunpack.c.l.b16 %v3283_v57  ;;  %v1522_v39 = vmul.f32 0.01, %v1516_v58 }
 0x5a8   : > { %v1597_v61 = vpack.c.b16 %v1594_v10, %v1593_v59  ;;  %v1526_v44 = vmax.f32 %v1516_v58, %v1522_v39  ;;  %v2269_v10 = vld [vmem:[%s3355_s6 + $0x20] sm:$0xff]  ;;  %v2270_v39 = vld [vmem:[%s3355_s6 + $0x28] sm:$0xff] }
 0x5aa   : > { %1609 = vmatmul.bf16.vlgmr.msra.gmra.mxu2 %v1597_v61  ;;  %1681 = vmatmul.bf16.vlgmr.msra.gmra.mxu3 %v1597_v61  ;;  %v1534_v16 = vadd.f32 %v1530_v15, %v1526_v44 }
 0x5ab   : > { %v1517_v11 = vpop.f32.mrf.mxu1 }
 0x5ac   : > { %v1518_v14 = vadd.f32 %v1517_v11, %v1483_v0  ;;  %v3289_v63 = vpack.c.bf16 %v1534_v16, %v1534_v16 }
 0x5ae   : > { %v1523_v19 = vmul.f32 0.01, %v1518_v14  ;;  %v1595_v49 = vunpack.c.l.b16 %v3289_v63 }
 0x5b0   : > { %v1527_v21 = vmax.f32 %v1518_v14, %v1523_v19  ;;  %v1860_v14 = vunpack.c.l.bf16 %v3281_v29  ;;  %v1805_v19 = vpop.permute.xlu1 %1804  ;;  %v1862_v29 = vunpack.c.l.bf16 %v3289_v63 }
 0x5b2   : > { %v1535_v23 = vadd.f32 %v1531_v22, %v1527_v21 }
 0x5b4   : > { %v3291_v33 = vpack.c.bf16 %v1535_v23, %v1535_v23 }
 0x5b6   : > { %v1596_v28 = vunpack.c.l.b16 %v3291_v33 }
 0x5b8   : > { %v1598_v31 = vpack.c.b16 %v1596_v28, %v1595_v49  ;;  %v1861_v28 = vunpack.c.l.bf16 %v3283_v57 }
 0x5ba   : > { %1614 = vmatmul.bf16.gmra.mxu2 %v1598_v31  ;;  %1686 = vmatmul.bf16.gmra.mxu3 %v1598_v31 }
 0x62d   : > { %v1682_v47 = vpop.f32.mrf.mxu3  ;;  %v1610_v42 = vpop.f32.mrf.mxu2 }
 0x62e   : > { %v1692_v43 = vpack.c.bf16 %v1682_v47, %v1682_v47  ;;  %v1620_v53 = vpack.c.bf16 %v1610_v42, %v1610_v42  ;;  %v1810_v47 = vpop.permute.xlu2 %1809 }
 0x630   : > { %v1712_v50 = vunpack.c.l.b16 %v1692_v43  ;;  %v1700_v2 = vunpack.c.l.b16 %v1620_v53  ;;  %v1863_v43 = vunpack.c.l.bf16 %v3291_v33 }
 0x635   : > { %v1684_v32 = vpop.f32.mrf.mxu3  ;;  %v1612_v35 = vpop.f32.mrf.mxu2 }
 0x636   : > { %v1693_v40 = vpack.c.bf16 %v1684_v32, %v1684_v32  ;;  %v1621_v6 = vpack.c.bf16 %v1612_v35, %v1612_v35 }
 0x638   : > { %v1713_v46 = vunpack.c.l.b16 %v1693_v40  ;;  %v1701_v55 = vunpack.c.l.b16 %v1621_v6 }
 0x63a   : > { %v1716_v62 = vpack.c.b16 %v1713_v46, %v1712_v50  ;;  %v1704_v3 = vpack.c.b16 %v1701_v55, %v1700_v2 }
 0x63d   : > { %v1687_v36 = vpop.f32.mrf.mxu3  ;;  %v1615_v34 = vpop.f32.mrf.mxu2 }
 0x63e   : > { %v1694_v38 = vpack.c.bf16 %v1687_v36, %v1687_v36  ;;  %v1622_v24 = vpack.c.bf16 %v1615_v34, %v1615_v34 }
 0x640   : > { %v1714_v60 = vunpack.c.l.b16 %v1694_v38  ;;  %v1702_v54 = vunpack.c.l.b16 %v1622_v24 }
 0x645   : > { %v1689_v37 = vpop.f32.mrf.mxu3  ;;  %v1617_v51 = vpop.f32.mrf.mxu2 }
 0x646   : > { %v1695_v41 = vpack.c.bf16 %v1689_v37, %v1689_v37  ;;  %v1623_v20 = vpack.c.bf16 %v1617_v51, %v1617_v51 }
 0x648   : > { %v1715_v45 = vunpack.c.l.b16 %v1695_v41  ;;  %v1703_v52 = vunpack.c.l.b16 %v1623_v20 }
 0x64a   : > { %v1717_v48 = vpack.c.b16 %v1715_v45, %v1714_v60  ;;  %v1705_v12 = vpack.c.b16 %v1703_v52, %v1702_v54 }
 0x64c   : > { %1768 = vmatpush.bf16.msra.mxu0 %v1717_v48 }
 0x650   : > { %1769 = vmatpush.bf16.msra.mxu0 %v1716_v62 }
 0x654   : > { %1770 = vmatpush.bf16.msra.mxu0 %v1598_v31 }
 0x658   : > { %1771 = vmatpush.bf16.msra.mxu0 %v1597_v61  ;;  %v1800_v61 = vpop.permute.xlu0 %1799 }
 0x65c   : > { %1772 = vmatpush.bf16.msra.mxu0 %v1705_v12 }
 0x660   : > { %1773 = vmatpush.bf16.msra.mxu0 %v1704_v3  ;;  %v1815_v34 = vpop.permute.xlu0 %1814 }
 0x663   : > { %2228 = vmatmul.msk.bf16.vlgmr.msra.gmra.mxu0 %vm1096_vm4, %v2267_v4 }
 0x673   : > { %2229 = vmatmul.msk.bf16.gmra.mxu0 %vm1096_vm4, %v2268_v5 }
 0x6e0   : > { %v1775_v7 = vpop.f32.mrf.mxu0 }
 0x6e1   : > { %v1776_v58 = vadd.f32 %v1775_v7, %v1733_v26 }
 0x6e8   : > { %v1777_v8 = vpop.f32.mrf.mxu0 }
 0x6e9   : > { %v1778_v30 = vadd.f32 %v1777_v8, %v1738_v9 }
 0x6eb   : > { %v1790_v59 = vpack.c.bf16 %v1778_v30, %v1776_v58 }
 0x6f0   : > { %v1780_v17 = vpop.f32.mrf.mxu0 }
 0x6f1   : > { %v1781_v25 = vadd.f32 %v1780_v17, %v1743_v13 }
 0x6f8   : > { %v1782_v1 = vpop.f32.mrf.mxu0 }
 0x6f9   : > { %v1783_v27 = vadd.f32 %v1782_v1, %v1748_v18 }
 0x6fb   : > { %v1791_v56 = vpack.c.bf16 %v1783_v27, %v1781_v25 }
 0x6fd   : > { %1839 = vmatpush.bf16.msra.mxu1 %v1791_v56 }
 0x701   : > { %1840 = vmatpush.bf16.msra.mxu1 %v1790_v59 }
 0x704   : > { %2246 = vmatmul.msk.bf16.vlgmr.msra.gmra.mxu1 %vm1162_vm13, %v2269_v10 }
 0x714   : > { %2247 = vmatmul.msk.bf16.gmra.mxu1 %vm1162_vm13, %v2270_v39 }
 0x781   : > { %v1842_v44 = vpop.f32.mrf.mxu1 }
 0x782   : > { %v1843_v0 = vadd.f32 %v1842_v44, %v1800_v61 }
 0x784   : > { %v1852_v11 = vmul.f32 0.01, %v1843_v0 }
 0x786   : > { %v1856_v15 = vmax.f32 %v1843_v0, %v1852_v11 }
 0x788   : > { %v1864_v16 = vadd.f32 %v1860_v14, %v1856_v15 }
 0x789   : > { %v1844_v21 = vpop.f32.mrf.mxu1 }
 0x78a   : > { %1868 = vst [vmem:[%s357_s20] sm:$0xff] %v1864_v16  ;;  %v1845_v22 = vadd.f32 %v1844_v21, %v1805_v19 }
 0x78c   : > { %v1853_v23 = vmul.f32 0.01, %v1845_v22 }
 0x78e   : > { %v1857_v49 = vmax.f32 %v1845_v22, %v1853_v23 }
 0x790   : > { %v1865_v31 = vadd.f32 %v1861_v28, %v1857_v49 }
 0x791   : > { %v1847_v42 = vpop.f32.mrf.mxu1 }
 0x792   : > { %1869 = vst [vmem:[%s357_s20 + $0x8] sm:$0xff] %v1865_v31  ;;  %v1848_v32 = vadd.f32 %v1847_v42, %v1810_v47 }
 0x794   : > { %v1854_v35 = vmul.f32 0.01, %v1848_v32 }
 0x796   : > { %v1858_v36 = vmax.f32 %v1848_v32, %v1854_v35 }
 0x798   : > { %v1866_v38 = vadd.f32 %v1862_v29, %v1858_v36 }
 0x799   : > { %v1849_v37 = vpop.f32.mrf.mxu1 }
 0x79a   : > { %1870 = vst [vmem:[%s357_s20 + $0x10] sm:$0xff] %v1866_v38  ;;  %v1850_v57 = vadd.f32 %v1849_v37, %v1815_v34 }
 0x79c   : > { %v1855_v40 = vmul.f32 0.01, %v1850_v57 }
 0x79e   : > { %v1859_v41 = vmax.f32 %v1850_v57, %v1855_v40 }
 0x7a0   : > { %v1867_v63 = vadd.f32 %v1863_v43, %v1859_v41 }
 0x7a2   : > { %1871 = vst [vmem:[%s357_s20 + $0x18] sm:$0xff] %v1867_v63 }
 0x7a3   : > { %2433 = shalt.err (!%p2430_p12)
}
 0x7a4   : > { %s2483_s10 = smov 128   ;;  %s2484_s20 = smov 8  }
 0x7a5   : > { %2286 = dma.vmem_to_hbm [thread:$0]  (%p2599_p3), %s1886_s17, 512, %s1888_s15, %s1873_s9, %s2483_s10, %s2483_s10, %s2484_s20  }
 0x7a6 PF: > { %s1902_s21 = sand.u32 1, %s2464_s27   ;;  %p3376_p13 = scmp.ge.s32.totalorder %s2476_s30, 2 }
 0x7a7   : > { %s1903_s18 = scalar_lea.sflag [#allocation4], %s1902_s21 }
 0x7a8   : > { %p2297_p0 = pnand %p3376_p13, %p2565_p6 }
 0x7aa   : > { %p2298_p5 = pneg %p2297_p0 }
 0x7ac   : > { %2459 = dma.done.wait (%p2298_p5), %s1903_s18, 512  }
 0x7ad   : > { %2461 = vsyncadd (%p2298_p5), %s1903_s18, 4294966784  ;;  %s3377_s23 = sld [smem:[#allocation11_spill]]  ;;  %p22_p7 = scmp.ge.s32.totalorder %s2583_s19, 4  }
 0x7ae   : > { %s3378_s27 = smov %s2468_s28  ;;  %s3379_s28 = smov %s2472_s29 }
 0x7af   : > { %s3381_s30 = smov %s2583_s19  ;;  %24 = sbr.rel (!%p22_p7) target bundleno = 8 (0x8), region = 112 }
 0x7b3   : > { %s3380_s29 = smov %s3377_s23 }
 0x7b4   :  { %1909 = vsyncpa [#allocation3], 1 }
 0x7b5   :  { %1911 = vsyncpa [#allocation3 + $0x1], 1 }
 0x7b6   :  { %1912 = vsyncpa [#allocation6], 1 }
 0x7b7   :  { %1913 = vsyncpa [#allocation4], 1 }
 0x7b8   :  { %1915 = vsyncpa [#allocation4 + $0x1], 1 }

</bundles_post_ra>
